<compile_context>
chip_gen: v7x
topology: tpu7x:2x2x1
jax: 0.10.0
libtpu: 0.0.40
codegen_flags: <defaults>
</compile_context>

<pallas_src>
import functools

import numpy as np
import jax
import jax.numpy as jnp
from jax.experimental import pallas as pl
from jax.experimental.pallas import tpu as pltpu

HIDDEN_SIZE = 12
OUTPUT_SIZE = 64
TIME_LAG = 8
EPS = 1e-5


# ---------------------------------------------------------------------------
# Structural (parameter-independent) constants, built once at import time.
# ---------------------------------------------------------------------------
def _build_structural_constants():
    # Conv2d(1,6,5,pad=2) Toeplitz gather pattern with columns PRE-PERMUTED into the
    # MaxPool2d(2) layout:  col = k*128 + oc*16 + py*4 + px, where k = dy*2+dx and the
    # conv output position is (oy, ox) = (2*py+dy, 2*px+dx).  The 2x2 max then becomes
    # a lane-aligned 4-way maximum over the four 128-lane slabs of the conv result.
    idx = np.zeros((64, 512), np.int32)
    msk = np.zeros((64, 512), np.float32)
    bsel = np.zeros((512,), np.int32)
    bmsk = np.zeros((512,), np.float32)
    for oc in range(6):
        for py in range(4):
            for px in range(4):
                for dy in range(2):
                    for dx in range(2):
                        col = (dy * 2 + dx) * 128 + oc * 16 + py * 4 + px
                        oy, ox = 2 * py + dy, 2 * px + dx
                        bsel[col] = oc
                        bmsk[col] = 1.0
                        for ky in range(5):
                            for kx in range(5):
                                iy, ix = oy + ky - 2, ox + kx - 2
                                if 0 <= iy < 8 and 0 <= ix < 8:
                                    idx[iy * 8 + ix, col] = oc * 25 + ky * 5 + kx
                                    msk[iy * 8 + ix, col] = 1.0
    return idx, msk, bsel, bmsk


_CONV_IDX, _CONV_MASK, _BIAS_SEL, _BIAS_MSK = _build_structural_constants()


# ---------------------------------------------------------------------------
# Kernel
# ---------------------------------------------------------------------------
def cnnlstm_kernel(x_ref, convw_ref, wfused_ref, whh_ref, decw_ref, vec_ref,
                   out_ref, *, batch):
    TB = x_ref.shape[0]
    BP = TB // TIME_LAG               # padded batch (multiple of 8)
    H = HIDDEN_SIZE

    vec = vec_ref[...]                                                   # (8, 512) slab
    x = x_ref[...]                                                       # (TB, 64)

    # Conv2d(1,6,5,pad=2) as a dense Toeplitz matmul with pool-permuted columns,
    # + bias, ReLU.  Columns k*128+96 .. k*128+127 are zero by construction.
    conv = jnp.maximum(
        jnp.dot(x, convw_ref[...], preferred_element_type=jnp.float32) + vec[0:1, :],
        0.0)                                                             # (TB, 512)

    # MaxPool2d(2): lane-aligned 4-way max over the four 128-lane slabs.
    pooled = jnp.maximum(jnp.maximum(conv[:, 0:128], conv[:, 128:256]),
                         jnp.maximum(conv[:, 256:384], conv[:, 384:512]))  # (TB, 128)

    # Encoder Linear(96,12) fused offline with the GRU input projection AND with the
    # z_last (residual) projection:   columns = [r(12) | z(12) | n(12) | z_last(12)].
    # r/z biases already include b_hh; n column includes only b_ih.
    gi_all = (jnp.dot(pooled, wfused_ref[...], preferred_element_type=jnp.float32)
              + vec[1:2, 0:4 * H])                                       # (TB, 48)

    # One-time gate extraction (off the recurrence critical path).
    gi_r = gi_all[:, 0:H]
    gi_z = gi_all[:, H:2 * H]
    gi_n = gi_all[:, 2 * H:3 * H]
    z_last = gi_all[(TIME_LAG - 1) * BP:, 3 * H:4 * H]                   # (BP, H)

    # GRU (batch_first, 1 layer, hidden=12, h0=0), PyTorch gate order [r, z, n].
    # whh has gate blocks at 128-lane-aligned offsets (0 / 128 / 256), so every per-step
    # slice below starts at a lane-tile boundary -- no cross-lane rotates in the loop.
    whh = whh_ref[...]                                                   # (12, 384)
    bhh_n = vec[2:3, 0:H]                                                # (1, 12)
    h = jnp.zeros((BP, H), jnp.float32)
    for t in range(TIME_LAG):
        lo = t * BP                                                      # 8-row aligned
        gh = jnp.dot(h, whh, preferred_element_type=jnp.float32)         # (BP, 384)
        r = jax.nn.sigmoid(gi_r[lo:lo + BP, :] + gh[:, 0:H])
        zg = jax.nn.sigmoid(gi_z[lo:lo + BP, :] + gh[:, 128:128 + H])
        n = jnp.tanh(gi_n[lo:lo + BP, :] + r * (gh[:, 256:256 + H] + bhh_n))
        h = (1.0 - zg) * n + zg * h

    # r_out[:, -1, :] + z[:, -1, :]
    s = h + z_last                                                       # (BP, 12)

    # Decoder: BN0 -> Linear(12,12) -> tanh -> BN1 -> Linear(12,64)
    # BatchNorm statistics only over the REAL batch rows; padded rows are masked out.
    mask = (jax.lax.broadcasted_iota(jnp.int32, (BP, 1), 0) < batch).astype(jnp.float32)
    inv_b = 1.0 / batch

    def bn(v, g, b):
        mu = jnp.sum(v * mask, axis=0, keepdims=True) * inv_b
        d = (v - mu) * mask
        var = jnp.sum(d * d, axis=0, keepdims=True) * inv_b
        return (v - mu) * jax.lax.rsqrt(var + EPS) * g + b

    decw = decw_ref[...]                                                 # (12, 192)
    y0 = bn(s, vec[3:4, 0:H], vec[3:4, 128:128 + H])
    t1 = jnp.tanh(jnp.dot(y0, decw[:, 0:H], preferred_element_type=jnp.float32)
                  + vec[4:5, 0:H])
    y1 = bn(t1, vec[3:4, 256:256 + H], vec[3:4, 384:384 + H])
    out_ref[...] = (jnp.dot(y1, decw[:, 128:192], preferred_element_type=jnp.float32)
                    + vec[4:5, 128:192])


# ---------------------------------------------------------------------------
# Parameters & operand preparation
# ---------------------------------------------------------------------------
def init_params(key):
    ks = jax.random.split(key, 12)

    def u(k, shape, fan_in):
        bound = 1.0 / np.sqrt(fan_in)
        return jax.random.uniform(k, shape, jnp.float32, -bound, bound)

    p = {}
    p["conv_w"] = u(ks[0], (6, 1, 5, 5), 25)        # Conv2d(1, 6, 5)
    p["conv_b"] = u(ks[1], (6,), 25)
    p["cnn_fc_w"] = u(ks[2], (12, 96), 96)          # Linear(96, 12)
    p["cnn_fc_b"] = u(ks[3], (12,), 96)
    p["w_ih"] = u(ks[4], (36, 12), 12)              # GRU weight_ih_l0 [r;z;n]
    p["w_hh"] = u(ks[5], (36, 12), 12)              # GRU weight_hh_l0
    p["b_ih"] = u(ks[6], (36,), 12)
    p["b_hh"] = u(ks[7], (36,), 12)
    p["bn0_g"] = jnp.ones((12,), jnp.float32)
    p["bn0_b"] = jnp.zeros((12,), jnp.float32)
    p["fc1_w"] = u(ks[8], (12, 12), 12)             # Linear(12, 12)
    p["fc1_b"] = u(ks[9], (12,), 12)
    p["bn1_g"] = jnp.ones((12,), jnp.float32)
    p["bn1_b"] = jnp.zeros((12,), jnp.float32)
    p["fc2_w"] = u(ks[10], (64, 12), 12)            # Linear(12, 64)
    p["fc2_b"] = u(ks[11], (64,), 12)
    return p


def build_operands(params):
    f32 = jnp.float32
    H = HIDDEN_SIZE

    # Conv Toeplitz (pool-permuted columns) via structural gather; jit-traceable.
    w_flat = params["conv_w"].reshape(-1).astype(f32)                    # (150,)
    conv_w = jnp.take(w_flat, jnp.asarray(_CONV_IDX)) * jnp.asarray(_CONV_MASK)   # (64, 512)
    conv_b = (jnp.take(params["conv_b"].astype(f32), jnp.asarray(_BIAS_SEL))
              * jnp.asarray(_BIAS_MSK))                                  # (512,)

    fcw_t = params["cnn_fc_w"].T                                         # (96, 12)
    fcb = params["cnn_fc_b"]                                             # (12,)
    wih_t = params["w_ih"].T                                             # (12, 36) cols [r|z|n]
    bih = params["b_ih"]                                                 # (36,)
    bhh = params["b_hh"]                                                 # (36,)
    whh_t = params["w_hh"].T                                             # (12, 36)

    # Fused input matmul: [r | z | n | z_last], K padded 96 -> 128 (pooled has 128 lanes).
    w_fused = jnp.zeros((128, 4 * H), f32)
    w_fused = w_fused.at[0:96, 0:3 * H].set(fcw_t @ wih_t)
    w_fused = w_fused.at[0:96, 3 * H:4 * H].set(fcw_t)
    b_fused = jnp.zeros((4 * H,), f32)
    b_fused = b_fused.at[0:3 * H].set(fcb @ wih_t + bih)
    b_fused = b_fused.at[0:2 * H].add(bhh[0:2 * H])                      # fold b_hh for r, z
    b_fused = b_fused.at[3 * H:4 * H].set(fcb)

    # Hidden-to-hidden weight with gate blocks at 128-lane-aligned column offsets.
    whh = jnp.zeros((H, 384), f32)
    whh = whh.at[:, 0:H].set(whh_t[:, 0:H])
    whh = whh.at[:, 128:128 + H].set(whh_t[:, H:2 * H])
    whh = whh.at[:, 256:256 + H].set(whh_t[:, 2 * H:3 * H])

    # Decoder weights coalesced into one slab: fc1_w.T at cols 0:12, fc2_w.T at 128:192.
    dec_w = jnp.zeros((H, 192), f32)
    dec_w = dec_w.at[:, 0:H].set(params["fc1_w"].T)
    dec_w = dec_w.at[:, 128:192].set(params["fc2_w"].T)

    # All small vectors coalesced into one (8, 512) slab.
    vec = jnp.zeros((8, 512), f32)
    vec = vec.at[0, :].set(conv_b)                                       # conv bias (permuted)
    vec = vec.at[1, 0:4 * H].set(b_fused)                                # fused gate bias
    vec = vec.at[2, 0:H].set(bhh[2 * H:3 * H])                           # b_hh (n gate only)
    vec = vec.at[3, 0:H].set(params["bn0_g"])
    vec = vec.at[3, 128:128 + H].set(params["bn0_b"])
    vec = vec.at[3, 256:256 + H].set(params["bn1_g"])
    vec = vec.at[3, 384:384 + H].set(params["bn1_b"])
    vec = vec.at[4, 0:H].set(params["fc1_b"])
    vec = vec.at[4, 128:192].set(params["fc2_b"])

    return [conv_w, w_fused, whh, dec_w, vec]


# ---------------------------------------------------------------------------
# Wrapper
# ---------------------------------------------------------------------------
def _cnnlstm_forward_impl(x, params):
    B, T = x.shape[0], x.shape[1]
    assert T == TIME_LAG
    B_pad = max(8, ((B + 7) // 8) * 8)                                   # sublane-aligned batch

    # Time-major, batch-padded flat frames: row index = t*B_pad + b.
    x_t = jnp.transpose(x, (1, 0, 2, 3)).reshape(T, B, 64).astype(jnp.float32)
    x_pad = jnp.zeros((T, B_pad, 64), jnp.float32).at[:, :B, :].set(x_t)
    x_flat = x_pad.reshape(T * B_pad, 64)

    operands = [x_flat] + build_operands(params)

    TBp = T * B_pad
    flops = (2 * TBp * (64 * 512 + 128 * 48)
             + T * 2 * B_pad * 12 * 384
             + 2 * B_pad * (12 * 12 + 12 * 64))
    transcendentals = T * B_pad * 36 + B_pad * 12
    bytes_accessed = sum(int(np.prod(o.shape)) * 4 for o in operands) + B_pad * OUTPUT_SIZE * 4

    kernel = functools.partial(cnnlstm_kernel, batch=B)

    out = pl.pallas_call(
        kernel,
        out_shape=jax.ShapeDtypeStruct((B_pad, OUTPUT_SIZE), jnp.float32),
        in_specs=[pl.BlockSpec(memory_space=pltpu.MemorySpace.VMEM)] * len(operands),
        out_specs=pl.BlockSpec(memory_space=pltpu.MemorySpace.VMEM),
        cost_estimate=pl.CostEstimate(flops=flops,
                                      transcendentals=transcendentals,
                                      bytes_accessed=bytes_accessed),
    )(*operands)
    return out[:B].reshape(B, 8, 8)


cnnlstm_forward = jax.jit(_cnnlstm_forward_impl)


# ---------------------------------------------------------------------------
# Pure-JAX reference matching the PyTorch forward (training-mode BatchNorm)
# ---------------------------------------------------------------------------
def reference_forward(x, params):
    B, T = x.shape[0], x.shape[1]
    xin = x.reshape(B * T, 1, 8, 8).astype(jnp.float32)
    conv = jax.lax.conv_general_dilated(
        xin, params["conv_w"], window_strides=(1, 1), padding=((2, 2), (2, 2)),
        dimension_numbers=("NCHW", "OIHW", "NCHW"))
    conv = jax.nn.relu(conv + params["conv_b"][None, :, None, None])
    pooled = jax.lax.reduce_window(conv, -jnp.inf, jax.lax.max,
                                   (1, 1, 2, 2), (1, 1, 2, 2), "VALID")
    feat = pooled.reshape(B * T, 96)
    z = (feat @ params["cnn_fc_w"].T + params["cnn_fc_b"]).reshape(B, T, 12)

    Wi = params["w_ih"].reshape(3, 12, 12)
    Wh = params["w_hh"].reshape(3, 12, 12)
    bi = params["b_ih"].reshape(3, 12)
    bh = params["b_hh"].reshape(3, 12)
    h = jnp.zeros((B, 12), jnp.float32)
    for t in range(T):
        xt = z[:, t, :]
        r = jax.nn.sigmoid(xt @ Wi[0].T + bi[0] + h @ Wh[0].T + bh[0])
        zg = jax.nn.sigmoid(xt @ Wi[1].T + bi[1] + h @ Wh[1].T + bh[1])
        n = jnp.tanh(xt @ Wi[2].T + bi[2] + r * (h @ Wh[2].T + bh[2]))
        h = (1.0 - zg) * n + zg * h
    s = h + z[:, -1, :]

    def bn(v, g, b):
        mu = v.mean(axis=0, keepdims=True)
        var = ((v - mu) ** 2).mean(axis=0, keepdims=True)
        return (v - mu) * jax.lax.rsqrt(var + EPS) * g + b

    y = bn(s, params["bn0_g"], params["bn0_b"])
    y = bn(jnp.tanh(y @ params["fc1_w"].T + params["fc1_b"]),
           params["bn1_g"], params["bn1_b"])
    out = y @ params["fc2_w"].T + params["fc2_b"]
    return out.reshape(B, 8, 8)


if __name__ == "__main__":
    key = jax.random.PRNGKey(0)
    kx, kp = jax.random.split(key)
    B = 2
    x = jax.random.normal(kx, (B, TIME_LAG, 8, 8), jnp.float32)
    params = init_params(kp)

    out = cnnlstm_forward(x, params)
    out = jax.block_until_ready(out)

    ref = reference_forward(x, params)
    assert out.shape == (B, 8, 8)
    np.testing.assert_allclose(np.asarray(out), np.asarray(ref), atol=2e-4, rtol=2e-4)
    print("KERNEL_OK")
</pallas_src>

<mosaic_0001>
module attributes {stable_mosaic.version = 11 : i64} {
  func.func @cnnlstm_kernel(%arg0: memref<64x64xf32, #tpu.memory_space<vmem>>, %arg1: memref<64x512xf32, #tpu.memory_space<vmem>>, %arg2: memref<128x48xf32, #tpu.memory_space<vmem>>, %arg3: memref<12x384xf32, #tpu.memory_space<vmem>>, %arg4: memref<12x192xf32, #tpu.memory_space<vmem>>, %arg5: memref<8x512xf32, #tpu.memory_space<vmem>>, %arg6: memref<8x64xf32, #tpu.memory_space<vmem>>) attributes {dimension_semantics = [], scalar_prefetch = 0 : i64, scratch_operands = 0 : i64, tpu.core_type = #tpu.core_type<tc>} {
    %c0 = arith.constant 0 : index
    %c0_0 = arith.constant 0 : index
    %0 = vector.load %arg5[%c0, %c0_0] : memref<8x512xf32, #tpu.memory_space<vmem>>, vector<8x512xf32>
    %c0_1 = arith.constant 0 : index
    %c0_2 = arith.constant 0 : index
    %1 = vector.load %arg0[%c0_1, %c0_2] : memref<64x64xf32, #tpu.memory_space<vmem>>, vector<64x64xf32>
    %c0_3 = arith.constant 0 : index
    %c0_4 = arith.constant 0 : index
    %2 = vector.load %arg1[%c0_3, %c0_4] : memref<64x512xf32, #tpu.memory_space<vmem>>, vector<64x512xf32>
    %cst = arith.constant dense<0.000000e+00> : vector<64x512xf32>
    %3 = tpu.matmul %1, %2, %cst {dimension_numbers = #tpu.dot_dimension_numbers<[1], [0], [0], [1], [0, 0, 1, 1], [], []>} : vector<64x64xf32>, vector<64x512xf32>, vector<64x512xf32> -> vector<64x512xf32>
    %4 = vector.extract_strided_slice %0 {offsets = [0, 0], sizes = [1, 512], strides = [1, 1]} : vector<8x512xf32> to vector<1x512xf32>
    %5 = vector.broadcast %4 : vector<1x512xf32> to vector<64x512xf32>
    %6 = arith.addf %3, %5 : vector<64x512xf32>
    %cst_5 = arith.constant 0.000000e+00 : f32
    %7 = vector.broadcast %cst_5 : f32 to vector<64x512xf32>
    %8 = arith.maximumf %6, %7 : vector<64x512xf32>
    %9 = vector.extract_strided_slice %8 {offsets = [0, 0], sizes = [64, 128], strides = [1, 1]} : vector<64x512xf32> to vector<64x128xf32>
    %10 = vector.extract_strided_slice %8 {offsets = [0, 128], sizes = [64, 128], strides = [1, 1]} : vector<64x512xf32> to vector<64x128xf32>
    %11 = arith.maximumf %9, %10 : vector<64x128xf32>
    %12 = vector.extract_strided_slice %8 {offsets = [0, 256], sizes = [64, 128], strides = [1, 1]} : vector<64x512xf32> to vector<64x128xf32>
    %13 = vector.extract_strided_slice %8 {offsets = [0, 384], sizes = [64, 128], strides = [1, 1]} : vector<64x512xf32> to vector<64x128xf32>
    %14 = arith.maximumf %12, %13 : vector<64x128xf32>
    %15 = arith.maximumf %11, %14 : vector<64x128xf32>
    %c0_6 = arith.constant 0 : index
    %c0_7 = arith.constant 0 : index
    %16 = vector.load %arg2[%c0_6, %c0_7] : memref<128x48xf32, #tpu.memory_space<vmem>>, vector<128x48xf32>
    %cst_8 = arith.constant dense<0.000000e+00> : vector<64x48xf32>
    %17 = tpu.matmul %15, %16, %cst_8 {dimension_numbers = #tpu.dot_dimension_numbers<[1], [0], [0], [1], [0, 0, 1, 1], [], []>} : vector<64x128xf32>, vector<128x48xf32>, vector<64x48xf32> -> vector<64x48xf32>
    %18 = vector.extract_strided_slice %0 {offsets = [1, 0], sizes = [1, 48], strides = [1, 1]} : vector<8x512xf32> to vector<1x48xf32>
    %19 = vector.broadcast %18 : vector<1x48xf32> to vector<64x48xf32>
    %20 = arith.addf %17, %19 : vector<64x48xf32>
    %21 = vector.extract_strided_slice %20 {offsets = [0, 0], sizes = [64, 12], strides = [1, 1]} : vector<64x48xf32> to vector<64x12xf32>
    %22 = vector.extract_strided_slice %20 {offsets = [0, 12], sizes = [64, 12], strides = [1, 1]} : vector<64x48xf32> to vector<64x12xf32>
    %23 = vector.extract_strided_slice %20 {offsets = [0, 24], sizes = [64, 12], strides = [1, 1]} : vector<64x48xf32> to vector<64x12xf32>
    %24 = vector.extract_strided_slice %20 {offsets = [56, 36], sizes = [8, 12], strides = [1, 1]} : vector<64x48xf32> to vector<8x12xf32>
    %c0_9 = arith.constant 0 : index
    %c0_10 = arith.constant 0 : index
    %25 = vector.load %arg3[%c0_9, %c0_10] : memref<12x384xf32, #tpu.memory_space<vmem>>, vector<12x384xf32>
    %26 = vector.extract_strided_slice %0 {offsets = [2, 0], sizes = [1, 12], strides = [1, 1]} : vector<8x512xf32> to vector<1x12xf32>
    %cst_11 = arith.constant 0.000000e+00 : f32
    %27 = vector.broadcast %cst_11 : f32 to vector<8x12xf32>
    %cst_12 = arith.constant dense<0.000000e+00> : vector<8x384xf32>
    %28 = tpu.matmul %27, %25, %cst_12 {dimension_numbers = #tpu.dot_dimension_numbers<[1], [0], [0], [1], [0, 0, 1, 1], [], []>} : vector<8x12xf32>, vector<12x384xf32>, vector<8x384xf32> -> vector<8x384xf32>
    %29 = vector.extract_strided_slice %21 {offsets = [0, 0], sizes = [8, 12], strides = [1, 1]} : vector<64x12xf32> to vector<8x12xf32>
    %30 = vector.extract_strided_slice %28 {offsets = [0, 0], sizes = [8, 12], strides = [1, 1]} : vector<8x384xf32> to vector<8x12xf32>
    %31 = arith.addf %29, %30 : vector<8x12xf32>
    %32 = arith.negf %31 : vector<8x12xf32>
    %33 = math.exp %32 : vector<8x12xf32>
    %cst_13 = arith.constant 1.000000e+00 : f32
    %34 = vector.broadcast %cst_13 : f32 to vector<8x12xf32>
    %35 = arith.addf %34, %33 : vector<8x12xf32>
    %36 = arith.divf %34, %35 : vector<8x12xf32>
    %37 = vector.extract_strided_slice %22 {offsets = [0, 0], sizes = [8, 12], strides = [1, 1]} : vector<64x12xf32> to vector<8x12xf32>
    %38 = vector.extract_strided_slice %28 {offsets = [0, 128], sizes = [8, 12], strides = [1, 1]} : vector<8x384xf32> to vector<8x12xf32>
    %39 = arith.addf %37, %38 : vector<8x12xf32>
    %40 = arith.negf %39 : vector<8x12xf32>
    %41 = math.exp %40 : vector<8x12xf32>
    %cst_14 = arith.constant 1.000000e+00 : f32
    %42 = vector.broadcast %cst_14 : f32 to vector<8x12xf32>
    %43 = arith.addf %42, %41 : vector<8x12xf32>
    %44 = arith.divf %42, %43 : vector<8x12xf32>
    %45 = vector.extract_strided_slice %23 {offsets = [0, 0], sizes = [8, 12], strides = [1, 1]} : vector<64x12xf32> to vector<8x12xf32>
    %46 = vector.extract_strided_slice %28 {offsets = [0, 256], sizes = [8, 12], strides = [1, 1]} : vector<8x384xf32> to vector<8x12xf32>
    %47 = vector.broadcast %26 : vector<1x12xf32> to vector<8x12xf32>
    %48 = arith.addf %46, %47 : vector<8x12xf32>
    %49 = arith.mulf %36, %48 : vector<8x12xf32>
    %50 = arith.addf %45, %49 : vector<8x12xf32>
    %51 = math.tanh %50 : vector<8x12xf32>
    %cst_15 = arith.constant 1.000000e+00 : f32
    %52 = vector.broadcast %cst_15 : f32 to vector<8x12xf32>
    %53 = arith.subf %52, %44 : vector<8x12xf32>
    %54 = arith.mulf %53, %51 : vector<8x12xf32>
    %55 = arith.mulf %44, %27 : vector<8x12xf32>
    %56 = arith.addf %54, %55 : vector<8x12xf32>
    %cst_16 = arith.constant dense<0.000000e+00> : vector<8x384xf32>
    %57 = tpu.matmul %56, %25, %cst_16 {dimension_numbers = #tpu.dot_dimension_numbers<[1], [0], [0], [1], [0, 0, 1, 1], [], []>} : vector<8x12xf32>, vector<12x384xf32>, vector<8x384xf32> -> vector<8x384xf32>
    %58 = vector.extract_strided_slice %21 {offsets = [8, 0], sizes = [8, 12], strides = [1, 1]} : vector<64x12xf32> to vector<8x12xf32>
    %59 = vector.extract_strided_slice %57 {offsets = [0, 0], sizes = [8, 12], strides = [1, 1]} : vector<8x384xf32> to vector<8x12xf32>
    %60 = arith.addf %58, %59 : vector<8x12xf32>
    %61 = arith.negf %60 : vector<8x12xf32>
    %62 = math.exp %61 : vector<8x12xf32>
    %cst_17 = arith.constant 1.000000e+00 : f32
    %63 = vector.broadcast %cst_17 : f32 to vector<8x12xf32>
    %64 = arith.addf %63, %62 : vector<8x12xf32>
    %65 = arith.divf %63, %64 : vector<8x12xf32>
    %66 = vector.extract_strided_slice %22 {offsets = [8, 0], sizes = [8, 12], strides = [1, 1]} : vector<64x12xf32> to vector<8x12xf32>
    %67 = vector.extract_strided_slice %57 {offsets = [0, 128], sizes = [8, 12], strides = [1, 1]} : vector<8x384xf32> to vector<8x12xf32>
    %68 = arith.addf %66, %67 : vector<8x12xf32>
    %69 = arith.negf %68 : vector<8x12xf32>
    %70 = math.exp %69 : vector<8x12xf32>
    %cst_18 = arith.constant 1.000000e+00 : f32
    %71 = vector.broadcast %cst_18 : f32 to vector<8x12xf32>
    %72 = arith.addf %71, %70 : vector<8x12xf32>
    %73 = arith.divf %71, %72 : vector<8x12xf32>
    %74 = vector.extract_strided_slice %23 {offsets = [8, 0], sizes = [8, 12], strides = [1, 1]} : vector<64x12xf32> to vector<8x12xf32>
    %75 = vector.extract_strided_slice %57 {offsets = [0, 256], sizes = [8, 12], strides = [1, 1]} : vector<8x384xf32> to vector<8x12xf32>
    %76 = vector.broadcast %26 : vector<1x12xf32> to vector<8x12xf32>
    %77 = arith.addf %75, %76 : vector<8x12xf32>
    %78 = arith.mulf %65, %77 : vector<8x12xf32>
    %79 = arith.addf %74, %78 : vector<8x12xf32>
    %80 = math.tanh %79 : vector<8x12xf32>
    %cst_19 = arith.constant 1.000000e+00 : f32
    %81 = vector.broadcast %cst_19 : f32 to vector<8x12xf32>
    %82 = arith.subf %81, %73 : vector<8x12xf32>
    %83 = arith.mulf %82, %80 : vector<8x12xf32>
    %84 = arith.mulf %73, %56 : vector<8x12xf32>
    %85 = arith.addf %83, %84 : vector<8x12xf32>
    %cst_20 = arith.constant dense<0.000000e+00> : vector<8x384xf32>
    %86 = tpu.matmul %85, %25, %cst_20 {dimension_numbers = #tpu.dot_dimension_numbers<[1], [0], [0], [1], [0, 0, 1, 1], [], []>} : vector<8x12xf32>, vector<12x384xf32>, vector<8x384xf32> -> vector<8x384xf32>
    %87 = vector.extract_strided_slice %21 {offsets = [16, 0], sizes = [8, 12], strides = [1, 1]} : vector<64x12xf32> to vector<8x12xf32>
    %88 = vector.extract_strided_slice %86 {offsets = [0, 0], sizes = [8, 12], strides = [1, 1]} : vector<8x384xf32> to vector<8x12xf32>
    %89 = arith.addf %87, %88 : vector<8x12xf32>
    %90 = arith.negf %89 : vector<8x12xf32>
    %91 = math.exp %90 : vector<8x12xf32>
    %cst_21 = arith.constant 1.000000e+00 : f32
    %92 = vector.broadcast %cst_21 : f32 to vector<8x12xf32>
    %93 = arith.addf %92, %91 : vector<8x12xf32>
    %94 = arith.divf %92, %93 : vector<8x12xf32>
    %95 = vector.extract_strided_slice %22 {offsets = [16, 0], sizes = [8, 12], strides = [1, 1]} : vector<64x12xf32> to vector<8x12xf32>
    %96 = vector.extract_strided_slice %86 {offsets = [0, 128], sizes = [8, 12], strides = [1, 1]} : vector<8x384xf32> to vector<8x12xf32>
    %97 = arith.addf %95, %96 : vector<8x12xf32>
    %98 = arith.negf %97 : vector<8x12xf32>
    %99 = math.exp %98 : vector<8x12xf32>
    %cst_22 = arith.constant 1.000000e+00 : f32
    %100 = vector.broadcast %cst_22 : f32 to vector<8x12xf32>
    %101 = arith.addf %100, %99 : vector<8x12xf32>
    %102 = arith.divf %100, %101 : vector<8x12xf32>
    %103 = vector.extract_strided_slice %23 {offsets = [16, 0], sizes = [8, 12], strides = [1, 1]} : vector<64x12xf32> to vector<8x12xf32>
    %104 = vector.extract_strided_slice %86 {offsets = [0, 256], sizes = [8, 12], strides = [1, 1]} : vector<8x384xf32> to vector<8x12xf32>
    %105 = vector.broadcast %26 : vector<1x12xf32> to vector<8x12xf32>
    %106 = arith.addf %104, %105 : vector<8x12xf32>
    %107 = arith.mulf %94, %106 : vector<8x12xf32>
    %108 = arith.addf %103, %107 : vector<8x12xf32>
    %109 = math.tanh %108 : vector<8x12xf32>
    %cst_23 = arith.constant 1.000000e+00 : f32
    %110 = vector.broadcast %cst_23 : f32 to vector<8x12xf32>
    %111 = arith.subf %110, %102 : vector<8x12xf32>
    %112 = arith.mulf %111, %109 : vector<8x12xf32>
    %113 = arith.mulf %102, %85 : vector<8x12xf32>
    %114 = arith.addf %112, %113 : vector<8x12xf32>
    %cst_24 = arith.constant dense<0.000000e+00> : vector<8x384xf32>
    %115 = tpu.matmul %114, %25, %cst_24 {dimension_numbers = #tpu.dot_dimension_numbers<[1], [0], [0], [1], [0, 0, 1, 1], [], []>} : vector<8x12xf32>, vector<12x384xf32>, vector<8x384xf32> -> vector<8x384xf32>
    %116 = vector.extract_strided_slice %21 {offsets = [24, 0], sizes = [8, 12], strides = [1, 1]} : vector<64x12xf32> to vector<8x12xf32>
    %117 = vector.extract_strided_slice %115 {offsets = [0, 0], sizes = [8, 12], strides = [1, 1]} : vector<8x384xf32> to vector<8x12xf32>
    %118 = arith.addf %116, %117 : vector<8x12xf32>
    %119 = arith.negf %118 : vector<8x12xf32>
    %120 = math.exp %119 : vector<8x12xf32>
    %cst_25 = arith.constant 1.000000e+00 : f32
    %121 = vector.broadcast %cst_25 : f32 to vector<8x12xf32>
    %122 = arith.addf %121, %120 : vector<8x12xf32>
    %123 = arith.divf %121, %122 : vector<8x12xf32>
    %124 = vector.extract_strided_slice %22 {offsets = [24, 0], sizes = [8, 12], strides = [1, 1]} : vector<64x12xf32> to vector<8x12xf32>
    %125 = vector.extract_strided_slice %115 {offsets = [0, 128], sizes = [8, 12], strides = [1, 1]} : vector<8x384xf32> to vector<8x12xf32>
    %126 = arith.addf %124, %125 : vector<8x12xf32>
    %127 = arith.negf %126 : vector<8x12xf32>
    %128 = math.exp %127 : vector<8x12xf32>
    %cst_26 = arith.constant 1.000000e+00 : f32
    %129 = vector.broadcast %cst_26 : f32 to vector<8x12xf32>
    %130 = arith.addf %129, %128 : vector<8x12xf32>
    %131 = arith.divf %129, %130 : vector<8x12xf32>
    %132 = vector.extract_strided_slice %23 {offsets = [24, 0], sizes = [8, 12], strides = [1, 1]} : vector<64x12xf32> to vector<8x12xf32>
    %133 = vector.extract_strided_slice %115 {offsets = [0, 256], sizes = [8, 12], strides = [1, 1]} : vector<8x384xf32> to vector<8x12xf32>
    %134 = vector.broadcast %26 : vector<1x12xf32> to vector<8x12xf32>
    %135 = arith.addf %133, %134 : vector<8x12xf32>
    %136 = arith.mulf %123, %135 : vector<8x12xf32>
    %137 = arith.addf %132, %136 : vector<8x12xf32>
    %138 = math.tanh %137 : vector<8x12xf32>
    %cst_27 = arith.constant 1.000000e+00 : f32
    %139 = vector.broadcast %cst_27 : f32 to vector<8x12xf32>
    %140 = arith.subf %139, %131 : vector<8x12xf32>
    %141 = arith.mulf %140, %138 : vector<8x12xf32>
    %142 = arith.mulf %131, %114 : vector<8x12xf32>
    %143 = arith.addf %141, %142 : vector<8x12xf32>
    %cst_28 = arith.constant dense<0.000000e+00> : vector<8x384xf32>
    %144 = tpu.matmul %143, %25, %cst_28 {dimension_numbers = #tpu.dot_dimension_numbers<[1], [0], [0], [1], [0, 0, 1, 1], [], []>} : vector<8x12xf32>, vector<12x384xf32>, vector<8x384xf32> -> vector<8x384xf32>
    %145 = vector.extract_strided_slice %21 {offsets = [32, 0], sizes = [8, 12], strides = [1, 1]} : vector<64x12xf32> to vector<8x12xf32>
    %146 = vector.extract_strided_slice %144 {offsets = [0, 0], sizes = [8, 12], strides = [1, 1]} : vector<8x384xf32> to vector<8x12xf32>
    %147 = arith.addf %145, %146 : vector<8x12xf32>
    %148 = arith.negf %147 : vector<8x12xf32>
    %149 = math.exp %148 : vector<8x12xf32>
    %cst_29 = arith.constant 1.000000e+00 : f32
    %150 = vector.broadcast %cst_29 : f32 to vector<8x12xf32>
    %151 = arith.addf %150, %149 : vector<8x12xf32>
    %152 = arith.divf %150, %151 : vector<8x12xf32>
    %153 = vector.extract_strided_slice %22 {offsets = [32, 0], sizes = [8, 12], strides = [1, 1]} : vector<64x12xf32> to vector<8x12xf32>
    %154 = vector.extract_strided_slice %144 {offsets = [0, 128], sizes = [8, 12], strides = [1, 1]} : vector<8x384xf32> to vector<8x12xf32>
    %155 = arith.addf %153, %154 : vector<8x12xf32>
    %156 = arith.negf %155 : vector<8x12xf32>
    %157 = math.exp %156 : vector<8x12xf32>
    %cst_30 = arith.constant 1.000000e+00 : f32
    %158 = vector.broadcast %cst_30 : f32 to vector<8x12xf32>
    %159 = arith.addf %158, %157 : vector<8x12xf32>
    %160 = arith.divf %158, %159 : vector<8x12xf32>
    %161 = vector.extract_strided_slice %23 {offsets = [32, 0], sizes = [8, 12], strides = [1, 1]} : vector<64x12xf32> to vector<8x12xf32>
    %162 = vector.extract_strided_slice %144 {offsets = [0, 256], sizes = [8, 12], strides = [1, 1]} : vector<8x384xf32> to vector<8x12xf32>
    %163 = vector.broadcast %26 : vector<1x12xf32> to vector<8x12xf32>
    %164 = arith.addf %162, %163 : vector<8x12xf32>
    %165 = arith.mulf %152, %164 : vector<8x12xf32>
    %166 = arith.addf %161, %165 : vector<8x12xf32>
    %167 = math.tanh %166 : vector<8x12xf32>
    %cst_31 = arith.constant 1.000000e+00 : f32
    %168 = vector.broadcast %cst_31 : f32 to vector<8x12xf32>
    %169 = arith.subf %168, %160 : vector<8x12xf32>
    %170 = arith.mulf %169, %167 : vector<8x12xf32>
    %171 = arith.mulf %160, %143 : vector<8x12xf32>
    %172 = arith.addf %170, %171 : vector<8x12xf32>
    %cst_32 = arith.constant dense<0.000000e+00> : vector<8x384xf32>
    %173 = tpu.matmul %172, %25, %cst_32 {dimension_numbers = #tpu.dot_dimension_numbers<[1], [0], [0], [1], [0, 0, 1, 1], [], []>} : vector<8x12xf32>, vector<12x384xf32>, vector<8x384xf32> -> vector<8x384xf32>
    %174 = vector.extract_strided_slice %21 {offsets = [40, 0], sizes = [8, 12], strides = [1, 1]} : vector<64x12xf32> to vector<8x12xf32>
    %175 = vector.extract_strided_slice %173 {offsets = [0, 0], sizes = [8, 12], strides = [1, 1]} : vector<8x384xf32> to vector<8x12xf32>
    %176 = arith.addf %174, %175 : vector<8x12xf32>
    %177 = arith.negf %176 : vector<8x12xf32>
    %178 = math.exp %177 : vector<8x12xf32>
    %cst_33 = arith.constant 1.000000e+00 : f32
    %179 = vector.broadcast %cst_33 : f32 to vector<8x12xf32>
    %180 = arith.addf %179, %178 : vector<8x12xf32>
    %181 = arith.divf %179, %180 : vector<8x12xf32>
    %182 = vector.extract_strided_slice %22 {offsets = [40, 0], sizes = [8, 12], strides = [1, 1]} : vector<64x12xf32> to vector<8x12xf32>
    %183 = vector.extract_strided_slice %173 {offsets = [0, 128], sizes = [8, 12], strides = [1, 1]} : vector<8x384xf32> to vector<8x12xf32>
    %184 = arith.addf %182, %183 : vector<8x12xf32>
    %185 = arith.negf %184 : vector<8x12xf32>
    %186 = math.exp %185 : vector<8x12xf32>
    %cst_34 = arith.constant 1.000000e+00 : f32
    %187 = vector.broadcast %cst_34 : f32 to vector<8x12xf32>
    %188 = arith.addf %187, %186 : vector<8x12xf32>
    %189 = arith.divf %187, %188 : vector<8x12xf32>
    %190 = vector.extract_strided_slice %23 {offsets = [40, 0], sizes = [8, 12], strides = [1, 1]} : vector<64x12xf32> to vector<8x12xf32>
    %191 = vector.extract_strided_slice %173 {offsets = [0, 256], sizes = [8, 12], strides = [1, 1]} : vector<8x384xf32> to vector<8x12xf32>
    %192 = vector.broadcast %26 : vector<1x12xf32> to vector<8x12xf32>
    %193 = arith.addf %191, %192 : vector<8x12xf32>
    %194 = arith.mulf %181, %193 : vector<8x12xf32>
    %195 = arith.addf %190, %194 : vector<8x12xf32>
    %196 = math.tanh %195 : vector<8x12xf32>
    %cst_35 = arith.constant 1.000000e+00 : f32
    %197 = vector.broadcast %cst_35 : f32 to vector<8x12xf32>
    %198 = arith.subf %197, %189 : vector<8x12xf32>
    %199 = arith.mulf %198, %196 : vector<8x12xf32>
    %200 = arith.mulf %189, %172 : vector<8x12xf32>
    %201 = arith.addf %199, %200 : vector<8x12xf32>
    %cst_36 = arith.constant dense<0.000000e+00> : vector<8x384xf32>
    %202 = tpu.matmul %201, %25, %cst_36 {dimension_numbers = #tpu.dot_dimension_numbers<[1], [0], [0], [1], [0, 0, 1, 1], [], []>} : vector<8x12xf32>, vector<12x384xf32>, vector<8x384xf32> -> vector<8x384xf32>
    %203 = vector.extract_strided_slice %21 {offsets = [48, 0], sizes = [8, 12], strides = [1, 1]} : vector<64x12xf32> to vector<8x12xf32>
    %204 = vector.extract_strided_slice %202 {offsets = [0, 0], sizes = [8, 12], strides = [1, 1]} : vector<8x384xf32> to vector<8x12xf32>
    %205 = arith.addf %203, %204 : vector<8x12xf32>
    %206 = arith.negf %205 : vector<8x12xf32>
    %207 = math.exp %206 : vector<8x12xf32>
    %cst_37 = arith.constant 1.000000e+00 : f32
    %208 = vector.broadcast %cst_37 : f32 to vector<8x12xf32>
    %209 = arith.addf %208, %207 : vector<8x12xf32>
    %210 = arith.divf %208, %209 : vector<8x12xf32>
    %211 = vector.extract_strided_slice %22 {offsets = [48, 0], sizes = [8, 12], strides = [1, 1]} : vector<64x12xf32> to vector<8x12xf32>
    %212 = vector.extract_strided_slice %202 {offsets = [0, 128], sizes = [8, 12], strides = [1, 1]} : vector<8x384xf32> to vector<8x12xf32>
    %213 = arith.addf %211, %212 : vector<8x12xf32>
    %214 = arith.negf %213 : vector<8x12xf32>
    %215 = math.exp %214 : vector<8x12xf32>
    %cst_38 = arith.constant 1.000000e+00 : f32
    %216 = vector.broadcast %cst_38 : f32 to vector<8x12xf32>
    %217 = arith.addf %216, %215 : vector<8x12xf32>
    %218 = arith.divf %216, %217 : vector<8x12xf32>
    %219 = vector.extract_strided_slice %23 {offsets = [48, 0], sizes = [8, 12], strides = [1, 1]} : vector<64x12xf32> to vector<8x12xf32>
    %220 = vector.extract_strided_slice %202 {offsets = [0, 256], sizes = [8, 12], strides = [1, 1]} : vector<8x384xf32> to vector<8x12xf32>
    %221 = vector.broadcast %26 : vector<1x12xf32> to vector<8x12xf32>
    %222 = arith.addf %220, %221 : vector<8x12xf32>
    %223 = arith.mulf %210, %222 : vector<8x12xf32>
    %224 = arith.addf %219, %223 : vector<8x12xf32>
    %225 = math.tanh %224 : vector<8x12xf32>
    %cst_39 = arith.constant 1.000000e+00 : f32
    %226 = vector.broadcast %cst_39 : f32 to vector<8x12xf32>
    %227 = arith.subf %226, %218 : vector<8x12xf32>
    %228 = arith.mulf %227, %225 : vector<8x12xf32>
    %229 = arith.mulf %218, %201 : vector<8x12xf32>
    %230 = arith.addf %228, %229 : vector<8x12xf32>
    %cst_40 = arith.constant dense<0.000000e+00> : vector<8x384xf32>
    %231 = tpu.matmul %230, %25, %cst_40 {dimension_numbers = #tpu.dot_dimension_numbers<[1], [0], [0], [1], [0, 0, 1, 1], [], []>} : vector<8x12xf32>, vector<12x384xf32>, vector<8x384xf32> -> vector<8x384xf32>
    %232 = vector.extract_strided_slice %21 {offsets = [56, 0], sizes = [8, 12], strides = [1, 1]} : vector<64x12xf32> to vector<8x12xf32>
    %233 = vector.extract_strided_slice %231 {offsets = [0, 0], sizes = [8, 12], strides = [1, 1]} : vector<8x384xf32> to vector<8x12xf32>
    %234 = arith.addf %232, %233 : vector<8x12xf32>
    %235 = arith.negf %234 : vector<8x12xf32>
    %236 = math.exp %235 : vector<8x12xf32>
    %cst_41 = arith.constant 1.000000e+00 : f32
    %237 = vector.broadcast %cst_41 : f32 to vector<8x12xf32>
    %238 = arith.addf %237, %236 : vector<8x12xf32>
    %239 = arith.divf %237, %238 : vector<8x12xf32>
    %240 = vector.extract_strided_slice %22 {offsets = [56, 0], sizes = [8, 12], strides = [1, 1]} : vector<64x12xf32> to vector<8x12xf32>
    %241 = vector.extract_strided_slice %231 {offsets = [0, 128], sizes = [8, 12], strides = [1, 1]} : vector<8x384xf32> to vector<8x12xf32>
    %242 = arith.addf %240, %241 : vector<8x12xf32>
    %243 = arith.negf %242 : vector<8x12xf32>
    %244 = math.exp %243 : vector<8x12xf32>
    %cst_42 = arith.constant 1.000000e+00 : f32
    %245 = vector.broadcast %cst_42 : f32 to vector<8x12xf32>
    %246 = arith.addf %245, %244 : vector<8x12xf32>
    %247 = arith.divf %245, %246 : vector<8x12xf32>
    %248 = vector.extract_strided_slice %23 {offsets = [56, 0], sizes = [8, 12], strides = [1, 1]} : vector<64x12xf32> to vector<8x12xf32>
    %249 = vector.extract_strided_slice %231 {offsets = [0, 256], sizes = [8, 12], strides = [1, 1]} : vector<8x384xf32> to vector<8x12xf32>
    %250 = vector.broadcast %26 : vector<1x12xf32> to vector<8x12xf32>
    %251 = arith.addf %249, %250 : vector<8x12xf32>
    %252 = arith.mulf %239, %251 : vector<8x12xf32>
    %253 = arith.addf %248, %252 : vector<8x12xf32>
    %254 = math.tanh %253 : vector<8x12xf32>
    %cst_43 = arith.constant 1.000000e+00 : f32
    %255 = vector.broadcast %cst_43 : f32 to vector<8x12xf32>
    %256 = arith.subf %255, %247 : vector<8x12xf32>
    %257 = arith.mulf %256, %254 : vector<8x12xf32>
    %258 = arith.mulf %247, %230 : vector<8x12xf32>
    %259 = arith.addf %257, %258 : vector<8x12xf32>
    %260 = arith.addf %259, %24 : vector<8x12xf32>
    %261 = tpu.iota {dimensions = array<i32: 0>} : vector<8x1xi32>
    %c2_i32 = arith.constant 2 : i32
    %262 = vector.broadcast %c2_i32 : i32 to vector<8x1xi32>
    %263 = arith.cmpi slt, %261, %262 : vector<8x1xi32>
    %264 = arith.extui %263 : vector<8x1xi1> to vector<8x1xi32>
    %265 = arith.sitofp %264 : vector<8x1xi32> to vector<8x1xf32>
    %c0_44 = arith.constant 0 : index
    %c0_45 = arith.constant 0 : index
    %266 = vector.load %arg4[%c0_44, %c0_45] : memref<12x192xf32, #tpu.memory_space<vmem>>, vector<12x192xf32>
    %267 = vector.extract_strided_slice %0 {offsets = [3, 0], sizes = [1, 12], strides = [1, 1]} : vector<8x512xf32> to vector<1x12xf32>
    %268 = vector.extract_strided_slice %0 {offsets = [3, 128], sizes = [1, 12], strides = [1, 1]} : vector<8x512xf32> to vector<1x12xf32>
    %269 = vector.broadcast %265 : vector<8x1xf32> to vector<8x12xf32>
    %270 = arith.mulf %260, %269 : vector<8x12xf32>
    %cst_46 = arith.constant dense<0.000000e+00> : vector<12xf32>
    %271 = vector.multi_reduction <add>, %270, %cst_46 [0] : vector<8x12xf32> to vector<12xf32>
    %272 = vector.shape_cast %271 : vector<12xf32> to vector<1x12xf32>
    %cst_47 = arith.constant 5.000000e-01 : f32
    %273 = vector.broadcast %cst_47 : f32 to vector<1x12xf32>
    %274 = arith.mulf %272, %273 : vector<1x12xf32>
    %275 = vector.broadcast %274 : vector<1x12xf32> to vector<8x12xf32>
    %276 = arith.subf %260, %275 : vector<8x12xf32>
    %277 = vector.broadcast %265 : vector<8x1xf32> to vector<8x12xf32>
    %278 = arith.mulf %276, %277 : vector<8x12xf32>
    %279 = arith.mulf %278, %278 : vector<8x12xf32>
    %cst_48 = arith.constant dense<0.000000e+00> : vector<12xf32>
    %280 = vector.multi_reduction <add>, %279, %cst_48 [0] : vector<8x12xf32> to vector<12xf32>
    %281 = vector.shape_cast %280 : vector<12xf32> to vector<1x12xf32>
    %cst_49 = arith.constant 5.000000e-01 : f32
    %282 = vector.broadcast %cst_49 : f32 to vector<1x12xf32>
    %283 = arith.mulf %281, %282 : vector<1x12xf32>
    %284 = vector.broadcast %274 : vector<1x12xf32> to vector<8x12xf32>
    %285 = arith.subf %260, %284 : vector<8x12xf32>
    %cst_50 = arith.constant 9.99999974E-6 : f32
    %286 = vector.broadcast %cst_50 : f32 to vector<1x12xf32>
    %287 = arith.addf %283, %286 : vector<1x12xf32>
    %288 = math.rsqrt %287 : vector<1x12xf32>
    %289 = vector.broadcast %288 : vector<1x12xf32> to vector<8x12xf32>
    %290 = arith.mulf %285, %289 : vector<8x12xf32>
    %291 = vector.broadcast %267 : vector<1x12xf32> to vector<8x12xf32>
    %292 = arith.mulf %290, %291 : vector<8x12xf32>
    %293 = vector.broadcast %268 : vector<1x12xf32> to vector<8x12xf32>
    %294 = arith.addf %292, %293 : vector<8x12xf32>
    %295 = vector.extract_strided_slice %266 {offsets = [0, 0], sizes = [12, 12], strides = [1, 1]} : vector<12x192xf32> to vector<12x12xf32>
    %cst_51 = arith.constant dense<0.000000e+00> : vector<8x12xf32>
    %296 = tpu.matmul %294, %295, %cst_51 {dimension_numbers = #tpu.dot_dimension_numbers<[1], [0], [0], [1], [0, 0, 1, 1], [], []>} : vector<8x12xf32>, vector<12x12xf32>, vector<8x12xf32> -> vector<8x12xf32>
    %297 = vector.extract_strided_slice %0 {offsets = [4, 0], sizes = [1, 12], strides = [1, 1]} : vector<8x512xf32> to vector<1x12xf32>
    %298 = vector.broadcast %297 : vector<1x12xf32> to vector<8x12xf32>
    %299 = arith.addf %296, %298 : vector<8x12xf32>
    %300 = math.tanh %299 : vector<8x12xf32>
    %301 = vector.extract_strided_slice %0 {offsets = [3, 256], sizes = [1, 12], strides = [1, 1]} : vector<8x512xf32> to vector<1x12xf32>
    %302 = vector.extract_strided_slice %0 {offsets = [3, 384], sizes = [1, 12], strides = [1, 1]} : vector<8x512xf32> to vector<1x12xf32>
    %303 = vector.broadcast %265 : vector<8x1xf32> to vector<8x12xf32>
    %304 = arith.mulf %300, %303 : vector<8x12xf32>
    %cst_52 = arith.constant dense<0.000000e+00> : vector<12xf32>
    %305 = vector.multi_reduction <add>, %304, %cst_52 [0] : vector<8x12xf32> to vector<12xf32>
    %306 = vector.shape_cast %305 : vector<12xf32> to vector<1x12xf32>
    %cst_53 = arith.constant 5.000000e-01 : f32
    %307 = vector.broadcast %cst_53 : f32 to vector<1x12xf32>
    %308 = arith.mulf %306, %307 : vector<1x12xf32>
    %309 = vector.broadcast %308 : vector<1x12xf32> to vector<8x12xf32>
    %310 = arith.subf %300, %309 : vector<8x12xf32>
    %311 = vector.broadcast %265 : vector<8x1xf32> to vector<8x12xf32>
    %312 = arith.mulf %310, %311 : vector<8x12xf32>
    %313 = arith.mulf %312, %312 : vector<8x12xf32>
    %cst_54 = arith.constant dense<0.000000e+00> : vector<12xf32>
    %314 = vector.multi_reduction <add>, %313, %cst_54 [0] : vector<8x12xf32> to vector<12xf32>
    %315 = vector.shape_cast %314 : vector<12xf32> to vector<1x12xf32>
    %cst_55 = arith.constant 5.000000e-01 : f32
    %316 = vector.broadcast %cst_55 : f32 to vector<1x12xf32>
    %317 = arith.mulf %315, %316 : vector<1x12xf32>
    %318 = vector.broadcast %308 : vector<1x12xf32> to vector<8x12xf32>
    %319 = arith.subf %300, %318 : vector<8x12xf32>
    %cst_56 = arith.constant 9.99999974E-6 : f32
    %320 = vector.broadcast %cst_56 : f32 to vector<1x12xf32>
    %321 = arith.addf %317, %320 : vector<1x12xf32>
    %322 = math.rsqrt %321 : vector<1x12xf32>
    %323 = vector.broadcast %322 : vector<1x12xf32> to vector<8x12xf32>
    %324 = arith.mulf %319, %323 : vector<8x12xf32>
    %325 = vector.broadcast %301 : vector<1x12xf32> to vector<8x12xf32>
    %326 = arith.mulf %324, %325 : vector<8x12xf32>
    %327 = vector.broadcast %302 : vector<1x12xf32> to vector<8x12xf32>
    %328 = arith.addf %326, %327 : vector<8x12xf32>
    %329 = vector.extract_strided_slice %266 {offsets = [0, 128], sizes = [12, 64], strides = [1, 1]} : vector<12x192xf32> to vector<12x64xf32>
    %cst_57 = arith.constant dense<0.000000e+00> : vector<8x64xf32>
    %330 = tpu.matmul %328, %329, %cst_57 {dimension_numbers = #tpu.dot_dimension_numbers<[1], [0], [0], [1], [0, 0, 1, 1], [], []>} : vector<8x12xf32>, vector<12x64xf32>, vector<8x64xf32> -> vector<8x64xf32>
    %331 = vector.extract_strided_slice %0 {offsets = [4, 128], sizes = [1, 64], strides = [1, 1]} : vector<8x512xf32> to vector<1x64xf32>
    %332 = vector.broadcast %331 : vector<1x64xf32> to vector<8x64xf32>
    %333 = arith.addf %330, %332 : vector<8x64xf32>
    %c0_58 = arith.constant 0 : index
    %c0_59 = arith.constant 0 : index
    %334 = vector.load %arg6[%c0_58, %c0_59] : memref<8x64xf32, #tpu.memory_space<vmem>>, vector<8x64xf32>
    tpu.vector_store %arg6[%c0_58, %c0_59], %333 {strides = array<i32>} : memref<8x64xf32, #tpu.memory_space<vmem>>, vector<8x64xf32>,
    return
  }
}

</mosaic_0001>

<bundles_post_ra>
// kernel: mul.8
= control target key start
LH: loop header
LB: loop body
LE: loop exit
PB: predicated region body
PF: predicated region fallthrough
CT: control target
= control target key end

     0   :  { %s716_s0 = inlined_call_operand.vmem [shape: f32[32768], index: 0, kind: input, shape index: {}]   ;;  %s717_s1 = inlined_call_operand.vmem [shape: f32[32768], index: 1, kind: input, shape index: {}]   ;;  %s718_s2 = inlined_call_operand.vmem [shape: f32[32768], index: 2, kind: output, shape index: {}]  }
   0x1   :  { %v3_v0 = vld [vmem:[%s716_s0] sm:$0xff]  ;;  %v320_v2 = vld [vmem:[%s716_s0 + $0x8] sm:$0xff]  ;;  %v323_v5 = vld [vmem:[%s716_s0 + $0x10] sm:$0xff] }
   0x2   :  { %v4_v1 = vld [vmem:[%s717_s1] sm:$0xff]  ;;  %v321_v4 = vld [vmem:[%s717_s1 + $0x8] sm:$0xff]  ;;  %v324_v6 = vld [vmem:[%s717_s1 + $0x10] sm:$0xff] }
   0x3   :  { %v7_v3 = vmul.f32 %v4_v1, %v3_v0  ;;  %v16_v7 = vmul.f32 %v321_v4, %v320_v2  ;;  %v26_v8 = vmul.f32 %v324_v6, %v323_v5  ;;  %v326_v9 = vld [vmem:[%s716_s0 + $0x18] sm:$0xff]  ;;  %v329_v11 = vld [vmem:[%s716_s0 + $0x20] sm:$0xff]  ;;  %v332_v14 = vld [vmem:[%s716_s0 + $0x28] sm:$0xff] }
   0x4   :  { %v327_v10 = vld [vmem:[%s717_s1 + $0x18] sm:$0xff]  ;;  %v330_v13 = vld [vmem:[%s717_s1 + $0x20] sm:$0xff]  ;;  %v333_v15 = vld [vmem:[%s717_s1 + $0x28] sm:$0xff] }
   0x5   :  { %9 = vst [vmem:[%s718_s2] sm:$0xff] %v7_v3  ;;  %v36_v12 = vmul.f32 %v327_v10, %v326_v9  ;;  %322 = vst [vmem:[%s718_s2 + $0x8] sm:$0xff] %v16_v7  ;;  %v46_v16 = vmul.f32 %v330_v13, %v329_v11  ;;  %v56_v17 = vmul.f32 %v333_v15, %v332_v14  ;;  %v335_v18 = vld [vmem:[%s716_s0 + $0x30] sm:$0xff]  ;;  %v338_v20 = vld [vmem:[%s716_s0 + $0x38] sm:$0xff] }
   0x6   :  { %325 = vst [vmem:[%s718_s2 + $0x10] sm:$0xff] %v26_v8  ;;  %v336_v19 = vld [vmem:[%s717_s1 + $0x30] sm:$0xff]  ;;  %v339_v22 = vld [vmem:[%s717_s1 + $0x38] sm:$0xff]  ;;  %v341_v23 = vld [vmem:[%s716_s0 + $0x40] sm:$0xff] }
   0x7   :  { %328 = vst [vmem:[%s718_s2 + $0x18] sm:$0xff] %v36_v12  ;;  %v66_v21 = vmul.f32 %v336_v19, %v335_v18  ;;  %v342_v24 = vld [vmem:[%s717_s1 + $0x40] sm:$0xff]  ;;  %331 = vst [vmem:[%s718_s2 + $0x20] sm:$0xff] %v46_v16  ;;  %v76_v25 = vmul.f32 %v339_v22, %v338_v20  ;;  %v344_v27 = vld [vmem:[%s716_s0 + $0x48] sm:$0xff] }
   0x8   :  { %334 = vst [vmem:[%s718_s2 + $0x28] sm:$0xff] %v56_v17  ;;  %v86_v26 = vmul.f32 %v342_v24, %v341_v23  ;;  %v345_v28 = vld [vmem:[%s717_s1 + $0x48] sm:$0xff]  ;;  %v347_v29 = vld [vmem:[%s716_s0 + $0x50] sm:$0xff]  ;;  %v350_v32 = vld [vmem:[%s716_s0 + $0x58] sm:$0xff] }
   0x9   :  { %337 = vst [vmem:[%s718_s2 + $0x30] sm:$0xff] %v66_v21  ;;  %v96_v30 = vmul.f32 %v345_v28, %v344_v27  ;;  %v348_v31 = vld [vmem:[%s717_s1 + $0x50] sm:$0xff]  ;;  %v351_v33 = vld [vmem:[%s717_s1 + $0x58] sm:$0xff]  ;;  %340 = vst [vmem:[%s718_s2 + $0x38] sm:$0xff] %v76_v25 }
   0xa   :  { %343 = vst [vmem:[%s718_s2 + $0x40] sm:$0xff] %v86_v26  ;;  %v106_v34 = vmul.f32 %v348_v31, %v347_v29  ;;  %v116_v35 = vmul.f32 %v351_v33, %v350_v32  ;;  %v353_v36 = vld [vmem:[%s716_s0 + $0x60] sm:$0xff]  ;;  %v356_v38 = vld [vmem:[%s716_s0 + $0x68] sm:$0xff]  ;;  %v359_v41 = vld [vmem:[%s716_s0 + $0x70] sm:$0xff] }
   0xb   :  { %v354_v37 = vld [vmem:[%s717_s1 + $0x60] sm:$0xff]  ;;  %346 = vst [vmem:[%s718_s2 + $0x48] sm:$0xff] %v96_v30  ;;  %v357_v40 = vld [vmem:[%s717_s1 + $0x68] sm:$0xff]  ;;  %v360_v42 = vld [vmem:[%s717_s1 + $0x70] sm:$0xff] }
   0xc   :  { %v126_v39 = vmul.f32 %v354_v37, %v353_v36  ;;  %349 = vst [vmem:[%s718_s2 + $0x50] sm:$0xff] %v106_v34  ;;  %352 = vst [vmem:[%s718_s2 + $0x58] sm:$0xff] %v116_v35  ;;  %v136_v43 = vmul.f32 %v357_v40, %v356_v38  ;;  %v146_v44 = vmul.f32 %v360_v42, %v359_v41  ;;  %v362_v45 = vld [vmem:[%s716_s0 + $0x78] sm:$0xff]  ;;  %v365_v47 = vld [vmem:[%s716_s0 + $0x80] sm:$0xff] }
   0xd   :  { %v363_v46 = vld [vmem:[%s717_s1 + $0x78] sm:$0xff]  ;;  %v366_v49 = vld [vmem:[%s717_s1 + $0x80] sm:$0xff]  ;;  %v368_v50 = vld [vmem:[%s716_s0 + $0x88] sm:$0xff] }
   0xe   :  { %355 = vst [vmem:[%s718_s2 + $0x60] sm:$0xff] %v126_v39  ;;  %v156_v48 = vmul.f32 %v363_v46, %v362_v45  ;;  %v369_v51 = vld [vmem:[%s717_s1 + $0x88] sm:$0xff]  ;;  %358 = vst [vmem:[%s718_s2 + $0x68] sm:$0xff] %v136_v43  ;;  %v166_v52 = vmul.f32 %v366_v49, %v365_v47  ;;  %v371_v54 = vld [vmem:[%s716_s0 + $0x90] sm:$0xff] }
   0xf   :  { %361 = vst [vmem:[%s718_s2 + $0x70] sm:$0xff] %v146_v44  ;;  %v176_v53 = vmul.f32 %v369_v51, %v368_v50  ;;  %v372_v55 = vld [vmem:[%s717_s1 + $0x90] sm:$0xff]  ;;  %v374_v56 = vld [vmem:[%s716_s0 + $0x98] sm:$0xff]  ;;  %v377_v59 = vld [vmem:[%s716_s0 + $0xa0] sm:$0xff] }
  0x10   :  { %364 = vst [vmem:[%s718_s2 + $0x78] sm:$0xff] %v156_v48  ;;  %v186_v57 = vmul.f32 %v372_v55, %v371_v54  ;;  %v375_v58 = vld [vmem:[%s717_s1 + $0x98] sm:$0xff]  ;;  %v378_v60 = vld [vmem:[%s717_s1 + $0xa0] sm:$0xff]  ;;  %367 = vst [vmem:[%s718_s2 + $0x80] sm:$0xff] %v166_v52 }
  0x11   :  { %370 = vst [vmem:[%s718_s2 + $0x88] sm:$0xff] %v176_v53  ;;  %v196_v61 = vmul.f32 %v375_v58, %v374_v56  ;;  %v206_v62 = vmul.f32 %v378_v60, %v377_v59  ;;  %v380_v63 = vld [vmem:[%s716_s0 + $0xa8] sm:$0xff]  ;;  %v383_v1 = vld [vmem:[%s716_s0 + $0xb0] sm:$0xff]  ;;  %v386_v4 = vld [vmem:[%s716_s0 + $0xb8] sm:$0xff] }
  0x12   :  { %v381_v0 = vld [vmem:[%s717_s1 + $0xa8] sm:$0xff]  ;;  %373 = vst [vmem:[%s718_s2 + $0x90] sm:$0xff] %v186_v57  ;;  %v384_v3 = vld [vmem:[%s717_s1 + $0xb0] sm:$0xff]  ;;  %v387_v5 = vld [vmem:[%s717_s1 + $0xb8] sm:$0xff] }
  0x13   :  { %v216_v2 = vmul.f32 %v381_v0, %v380_v63  ;;  %376 = vst [vmem:[%s718_s2 + $0x98] sm:$0xff] %v196_v61  ;;  %379 = vst [vmem:[%s718_s2 + $0xa0] sm:$0xff] %v206_v62  ;;  %v226_v6 = vmul.f32 %v384_v3, %v383_v1  ;;  %v236_v7 = vmul.f32 %v387_v5, %v386_v4  ;;  %v389_v8 = vld [vmem:[%s716_s0 + $0xc0] sm:$0xff]  ;;  %v392_v10 = vld [vmem:[%s716_s0 + $0xc8] sm:$0xff] }
  0x14   :  { %v390_v9 = vld [vmem:[%s717_s1 + $0xc0] sm:$0xff]  ;;  %v393_v12 = vld [vmem:[%s717_s1 + $0xc8] sm:$0xff]  ;;  %v395_v13 = vld [vmem:[%s716_s0 + $0xd0] sm:$0xff] }
  0x15   :  { %382 = vst [vmem:[%s718_s2 + $0xa8] sm:$0xff] %v216_v2  ;;  %v246_v11 = vmul.f32 %v390_v9, %v389_v8  ;;  %v396_v14 = vld [vmem:[%s717_s1 + $0xd0] sm:$0xff]  ;;  %385 = vst [vmem:[%s718_s2 + $0xb0] sm:$0xff] %v226_v6  ;;  %v256_v15 = vmul.f32 %v393_v12, %v392_v10  ;;  %v398_v17 = vld [vmem:[%s716_s0 + $0xd8] sm:$0xff] }
  0x16   :  { %388 = vst [vmem:[%s718_s2 + $0xb8] sm:$0xff] %v236_v7  ;;  %v266_v16 = vmul.f32 %v396_v14, %v395_v13  ;;  %v399_v18 = vld [vmem:[%s717_s1 + $0xd8] sm:$0xff]  ;;  %v401_v19 = vld [vmem:[%s716_s0 + $0xe0] sm:$0xff]  ;;  %v404_v22 = vld [vmem:[%s716_s0 + $0xe8] sm:$0xff] }
  0x17   :  { %391 = vst [vmem:[%s718_s2 + $0xc0] sm:$0xff] %v246_v11  ;;  %v276_v20 = vmul.f32 %v399_v18, %v398_v17  ;;  %v402_v21 = vld [vmem:[%s717_s1 + $0xe0] sm:$0xff]  ;;  %v405_v23 = vld [vmem:[%s717_s1 + $0xe8] sm:$0xff]  ;;  %394 = vst [vmem:[%s718_s2 + $0xc8] sm:$0xff] %v256_v15 }
  0x18   :  { %397 = vst [vmem:[%s718_s2 + $0xd0] sm:$0xff] %v266_v16  ;;  %v286_v24 = vmul.f32 %v402_v21, %v401_v19  ;;  %v296_v25 = vmul.f32 %v405_v23, %v404_v22  ;;  %v407_v26 = vld [vmem:[%s716_s0 + $0xf0] sm:$0xff]  ;;  %v410_v28 = vld [vmem:[%s716_s0 + $0xf8] sm:$0xff] }
  0x19   :  { %v408_v27 = vld [vmem:[%s717_s1 + $0xf0] sm:$0xff]  ;;  %400 = vst [vmem:[%s718_s2 + $0xd8] sm:$0xff] %v276_v20  ;;  %v411_v30 = vld [vmem:[%s717_s1 + $0xf8] sm:$0xff] }
  0x1a   :  { %v306_v29 = vmul.f32 %v408_v27, %v407_v26  ;;  %403 = vst [vmem:[%s718_s2 + $0xe0] sm:$0xff] %v286_v24  ;;  %406 = vst [vmem:[%s718_s2 + $0xe8] sm:$0xff] %v296_v25  ;;  %v316_v31 = vmul.f32 %v411_v30, %v410_v28 }
  0x1c   :  { %409 = vst [vmem:[%s718_s2 + $0xf0] sm:$0xff] %v306_v29  ;;  %412 = vst [vmem:[%s718_s2 + $0xf8] sm:$0xff] %v316_v31 }

// kernel: _cnnlstm_forward_impl.1
= control target key start
LH: loop header
LB: loop body
LE: loop exit
PB: predicated region body
PF: predicated region fallthrough
CT: control target
= control target key end

     0   :  { %v2724_v3 = vmov 0.0   ;;  %vm525_vm0 = vcmask 1043456   ;;  %vm2725_vm1 = vmmov 1   ;;  %vm83_vm3 = vcmask 523264   ;;  %s2728_s27 = smov 24   ;;  %s2729_s28 = smov 12   ;;  %s3306_s1 = inlined_call_operand.vmem [shape: f32[64,512], index: 1, kind: input, shape index: {}]   ;;  %s3307_s2 = inlined_call_operand.vmem [shape: f32[128,48], index: 2, kind: input, shape index: {}]   ;;  %s3308_s3 = inlined_call_operand.vmem [shape: f32[12,384], index: 3, kind: input, shape index: {}]   ;;  %s3309_s0 = inlined_call_operand.vmem [shape: f32[64,64], index: 0, kind: input, shape index: {}]   ;;  %s3310_s5 = inlined_call_operand.vmem [shape: f32[8,512], index: 5, kind: input, shape index: {}]   ;;  %s3311_s4 = inlined_call_operand.vmem [shape: f32[12,192], index: 4, kind: input, shape index: {}]   ;;  %s3312_s6 = inlined_call_operand.vmem [shape: f32[8,64], index: 6, kind: output, shape index: {}]  }
   0x1   :  { %v36_v0 = vld [vmem:[%s3306_s1 + $0x8] sm:$0xff]  ;;  %v38_v2 = vld [vmem:[%s3306_s1 + $0x18] sm:$0xff]  ;;  %172 = vmatprep.mubr.f32.mxu0 %v2724_v3  ;;  %285 = vmatprep.mubr.f32.mxu1 %v2724_v3  ;;  %v35_v6 = vld [vmem:[%s3306_s1] sm:$0xff]  ;;  %vm2727_vm4 = vmmov 0   ;;  %s2730_s29 = smov 116   ;;  %vm521_vm5 = vcmask 97280  }
   0x2   :  { %v40_v1 = vld [vmem:[%s3306_s1 + $0x28] sm:$0xff]  ;;  %v42_v5 = vld [vmem:[%s3306_s1 + $0x38] sm:$0xff]  ;;  %v39_v7 = vld [vmem:[%s3306_s1 + $0x20] sm:$0xff]  ;;  %s2731_s30 = smov 104   ;;  %vm1989_vm7 = vcmask 195680  }
   0x3   :  { %v2474_v4 = vpack.c.bf16 %v40_v1, %v36_v0  ;;  %v2490_v8 = vpack.c.bf16 %v42_v5, %v38_v2  ;;  %v2476_v9 = vpack.c.bf16 %v39_v7, %v35_v6  ;;  %v37_v10 = vld [vmem:[%s3306_s1 + $0x10] sm:$0xff]  ;;  %v44_v12 = vld [vmem:[%s3306_s1 + $0x48] sm:$0xff]  ;;  %v46_v15 = vld [vmem:[%s3306_s1 + $0x58] sm:$0xff] }
   0x4   :  { %v41_v11 = vld [vmem:[%s3306_s1 + $0x30] sm:$0xff]  ;;  %v48_v14 = vld [vmem:[%s3306_s1 + $0x68] sm:$0xff]  ;;  %v50_v16 = vld [vmem:[%s3306_s1 + $0x78] sm:$0xff] }
   0x5   :  { %2475 = vmatprep.subr.bf16.mxu0 %v2474_v4  ;;  %v2492_v13 = vpack.c.bf16 %v41_v11, %v37_v10  ;;  %2491 = vmatprep.subr.bf16.mxu1 %v2490_v8  ;;  %v2478_v17 = vpack.c.bf16 %v48_v14, %v44_v12  ;;  %v2494_v18 = vpack.c.bf16 %v50_v16, %v46_v15  ;;  %v43_v19 = vld [vmem:[%s3306_s1 + $0x40] sm:$0xff]  ;;  %v45_v21 = vld [vmem:[%s3306_s1 + $0x50] sm:$0xff]  ;;  %v52_v24 = vld [vmem:[%s3306_s1 + $0x88] sm:$0xff] }
   0x6   :  { %2477 = vmatpush1.bf16.msra.mxu0 %v2476_v9  ;;  %v47_v20 = vld [vmem:[%s3306_s1 + $0x60] sm:$0xff]  ;;  %v49_v23 = vld [vmem:[%s3306_s1 + $0x70] sm:$0xff]  ;;  %v56_v25 = vld [vmem:[%s3306_s1 + $0xa8] sm:$0xff] }
   0x7   :  { %2493 = vmatpush1.bf16.msra.mxu1 %v2492_v13  ;;  %v2480_v22 = vpack.c.bf16 %v47_v20, %v43_v19  ;;  %2479 = vmatprep.subr.bf16.mxu0 %v2478_v17  ;;  %v2496_v26 = vpack.c.bf16 %v49_v23, %v45_v21  ;;  %v2482_v27 = vpack.c.bf16 %v56_v25, %v52_v24  ;;  %v54_v28 = vld [vmem:[%s3306_s1 + $0x98] sm:$0xff]  ;;  %v51_v30 = vld [vmem:[%s3306_s1 + $0x80] sm:$0xff]  ;;  %v53_v33 = vld [vmem:[%s3306_s1 + $0x90] sm:$0xff] }
   0x8   :  { %2495 = vmatprep.subr.bf16.mxu1 %v2494_v18  ;;  %v58_v29 = vld [vmem:[%s3306_s1 + $0xb8] sm:$0xff]  ;;  %v55_v32 = vld [vmem:[%s3306_s1 + $0xa0] sm:$0xff]  ;;  %v57_v34 = vld [vmem:[%s3306_s1 + $0xb0] sm:$0xff] }
   0x9   :  { %v2498_v31 = vpack.c.bf16 %v58_v29, %v54_v28  ;;  %v2484_v35 = vpack.c.bf16 %v55_v32, %v51_v30  ;;  %v60_v36 = vld [vmem:[%s3306_s1 + $0xc8] sm:$0xff]  ;;  %v62_v38 = vld [vmem:[%s3306_s1 + $0xd8] sm:$0xff]  ;;  %v2500_v39 = vpack.c.bf16 %v57_v34, %v53_v33  ;;  %v59_v42 = vld [vmem:[%s3306_s1 + $0xc0] sm:$0xff]  ;;  %v67_v29 = vlaneseq }
   0xa   :  { %2481 = vmatpush1.bf16.msra.mxu0 %v2480_v22  ;;  %v64_v37 = vld [vmem:[%s3306_s1 + $0xe8] sm:$0xff]  ;;  %v66_v41 = vld [vmem:[%s3306_s1 + $0xf8] sm:$0xff]  ;;  %v63_v43 = vld [vmem:[%s3306_s1 + $0xe0] sm:$0xff] }
   0xb   :  { %2497 = vmatpush1.bf16.msra.mxu1 %v2496_v26  ;;  %2483 = vmatprep.subr.bf16.mxu0 %v2482_v27  ;;  %v2486_v40 = vpack.c.bf16 %v64_v37, %v60_v36  ;;  %v2502_v44 = vpack.c.bf16 %v66_v41, %v62_v38  ;;  %v61_v45 = vld [vmem:[%s3306_s1 + $0xd0] sm:$0xff]  ;;  %v390_v47 = vld [vmem:[%s3307_s2] sm:$0xff]  ;;  %v391_v48 = vld [vmem:[%s3307_s2 + $0x8] sm:$0xff]  ;;  %v2488_v49 = vpack.c.bf16 %v63_v43, %v59_v42  ;;  %v2726_v27 = vmov 0.0|0.0  }
   0xc   :  { %2499 = vmatprep.subr.bf16.mxu1 %v2498_v31  ;;  %v65_v46 = vld [vmem:[%s3306_s1 + $0xf0] sm:$0xff]  ;;  %v516_v50 = vld [vmem:[%s3308_s3 + $0x8] sm:$0xff]  ;;  %v519_v51 = vld [vmem:[%s3308_s3 + $0x20] sm:$0xf]  ;;  %v2506_v53 = vpack.c.bf16 %v391_v48, %v390_v47  ;;  %v3021_v30 = vshrl.u32 %v67_v29, 7 }
   0xd   :  { %v2504_v52 = vpack.c.bf16 %v65_v46, %v61_v45  ;;  %v2877_v54 = vpack.c.bf16 %v519_v51, %v516_v50  ;;  %vm2879_vm2 = vmpackc.low %vm525_vm0, %vm2725_vm1  ;;  %v392_v56 = vld [vmem:[%s3307_s2 + $0x10] sm:$0xff]  ;;  %v393_v57 = vld [vmem:[%s3307_s2 + $0x18] sm:$0xff] }
   0xe   :  { %2485 = vmatpush1.bf16.msra.mxu0 %v2484_v35  ;;  %v515_v58 = vld [vmem:[%s3308_s3] sm:$0xff]  ;;  %v518_v59 = vld [vmem:[%s3308_s3 + $0x18] sm:$0xf]  ;;  %v2510_v61 = vpack.c.bf16 %v393_v57, %v392_v56  ;;  %v395_v0 = vld [vmem:[%s3307_s2 + $0x28] sm:$0xff]  ;;  %v69_v31 = vsub.s32 0, %v3021_v30  ;;  %vm1981_vm6 = vcmp.lt.s32.totalorder %v3021_v30, 2 }
   0xf   :  { %2501 = vmatpush1.bf16.msra.mxu1 %v2500_v39  ;;  %2487 = vmatprep.subr.bf16.mxu0 %v2486_v40  ;;  %v27_v60 = vld [vmem:[%s3309_s0] sm:$0xff]  ;;  %v2901_v62 = vpack.c.bf16 %v518_v59, %v515_v58  ;;  %v28_v1 = vld [vmem:[%s3309_s0 + $0x8] sm:$0xff]  ;;  %v396_v4 = vld [vmem:[%s3307_s2 + $0x30] sm:$0xff] }
  0x10   :  { %2503 = vmatprep.subr.bf16.mxu1 %v2502_v44  ;;  %v394_v63 = vld [vmem:[%s3307_s2 + $0x20] sm:$0xff]  ;;  %v397_v5 = vld [vmem:[%s3307_s2 + $0x38] sm:$0xff]  ;;  %v29_v6 = vld [vmem:[%s3309_s0 + $0x10] sm:$0xff] }
  0x11   :  { %v2514_v2 = vpack.c.bf16 %v395_v0, %v394_v63  ;;  %v2518_v7 = vpack.c.bf16 %v397_v5, %v396_v4  ;;  %v398_v8 = vld [vmem:[%s3307_s2 + $0x40] sm:$0xff]  ;;  %v399_v9 = vld [vmem:[%s3307_s2 + $0x48] sm:$0xff]  ;;  %v30_v10 = vld [vmem:[%s3309_s0 + $0x18] sm:$0xff] }
  0x12   :  { %2489 = vmatpush1.bf16.msra.mxu0 %v2488_v49  ;;  %v2522_v11 = vpack.c.bf16 %v399_v9, %v398_v8  ;;  %v31_v12 = vld [vmem:[%s3309_s0 + $0x20] sm:$0xff]  ;;  %v32_v13 = vld [vmem:[%s3309_s0 + $0x28] sm:$0xff]  ;;  %v400_v14 = vld [vmem:[%s3307_s2 + $0x50] sm:$0xff] }
  0x13   :  { %2505 = vmatpush1.bf16.msra.mxu1 %v2504_v52  ;;  %2507 = vmatprep.subr.bf16.mxu0 %v2506_v53  ;;  %v401_v15 = vld [vmem:[%s3307_s2 + $0x58] sm:$0xff]  ;;  %v33_v17 = vld [vmem:[%s3309_s0 + $0x30] sm:$0xff]  ;;  %v402_v18 = vld [vmem:[%s3307_s2 + $0x60] sm:$0xff] }
  0x14   :  { %2540 = vmatprep.subr.msk.bf16.mxu1 %vm2879_vm2, %v2877_v54  ;;  %v2526_v16 = vpack.c.bf16 %v401_v15, %v400_v14  ;;  %v403_v19 = vld [vmem:[%s3307_s2 + $0x68] sm:$0xff]  ;;  %v34_v21 = vld [vmem:[%s3309_s0 + $0x38] sm:$0xff]  ;;  %v404_v22 = vld [vmem:[%s3307_s2 + $0x70] sm:$0xff] }
  0x15   :  { %2231 = vmatmul.mubr.msk.f32.vlgmr.msra.gmra.mrb[0].mxu0 %vm83_vm3, %v27_v60  ;;  %v2530_v20 = vpack.c.bf16 %v403_v19, %v402_v18  ;;  %v405_v23 = vld [vmem:[%s3307_s2 + $0x78] sm:$0xff]  ;;  %v517_v25 = vld [vmem:[%s3308_s3 + $0x10] sm:$0xff]  ;;  %v520_v26 = vld [vmem:[%s3308_s3 + $0x28] sm:$0xf] }
  0x16   :  { %2239 = vmatmul.mubr.msk.f32.vlgmr.msra.gmra.mrb[0].mxu1 %vm83_vm3, %v27_v60  ;;  %178 = vmatprep.mubr.f32.mxu0 %v2724_v3  ;;  %v2534_v24 = vpack.c.bf16 %v405_v23, %v404_v22  ;;  %v3005_v28 = vpack.c.bf16 %v520_v26, %v517_v25  ;;  %v3027_v32 = vld [vmem:[%s3310_s5] sm:$0xff]  ;;  %v25_v33 = vld [vmem:[%s3310_s5 + $0x10] sm:$0xff]  ;;  %v3035_v34 = vld [vmem:[%s3310_s5 + $0x8] sm:$0xff] }
  0x17   :  { %291 = vmatprep.mubr.f32.mxu1 %v2724_v3  ;;  %2509 = vmatpush3.bf16.msra.mxu0 %v2506_v53  ;;  %v26_v35 = vld [vmem:[%s3310_s5 + $0x18] sm:$0xff]  ;;  %v3041_v36 = vrot.slane %v3027_v32, %v69_v31  ;;  %v3043_v37 = vrot.slane %v25_v33, %v69_v31  ;;  %v3046_v38 = vrot.slane %v3035_v34, %v69_v31 }
  0x18   :  { %2511 = vmatprep.subr.bf16.mxu0 %v2510_v61  ;;  %2543 = vmatpush1.bf16.msk.msra.mxu1 %vm2879_vm2, %v2901_v62  ;;  %v3048_v39 = vrot.slane %v26_v35, %v69_v31 }
  0x19   :  { %2232 = vmatmul.mubr.msk.f32.gmra.mrb[2].mxu0 %vm83_vm3, %v28_v1  ;;  %2544 = vmatprep.subr.bf16.mxu1 %v2726_v27 }
  0x1a   :  { %2240 = vmatmul.mubr.msk.f32.gmra.mrb[2].mxu1 %vm83_vm3, %v28_v1  ;;  %184 = vmatprep.mubr.f32.mxu0 %v2724_v3 }
  0x1b   :  { %2513 = vmatpush3.bf16.msra.mxu0 %v2510_v61  ;;  %297 = vmatprep.mubr.f32.mxu1 %v2724_v3 }
  0x1c   :  { %2515 = vmatprep.subr.bf16.mxu0 %v2514_v2 }
  0x1d   :  { %2233 = vmatmul.mubr.msk.f32.gmra.mrb[4].mxu0 %vm83_vm3, %v29_v6 }
  0x1e   :  { %2241 = vmatmul.mubr.msk.f32.gmra.mrb[4].mxu1 %vm83_vm3, %v29_v6  ;;  %190 = vmatprep.mubr.f32.mxu0 %v2724_v3 }
  0x1f   :  { %2517 = vmatpush3.bf16.msra.mxu0 %v2514_v2  ;;  %303 = vmatprep.mubr.f32.mxu1 %v2724_v3 }
  0x20   :  { %2519 = vmatprep.subr.bf16.mxu0 %v2518_v7 }
  0x21   :  { %2234 = vmatmul.mubr.msk.f32.gmra.mrb[6].mxu0 %vm83_vm3, %v30_v10 }
  0x22   :  { %2242 = vmatmul.mubr.msk.f32.gmra.mrb[6].mxu1 %vm83_vm3, %v30_v10  ;;  %196 = vmatprep.mubr.f32.mxu0 %v2724_v3 }
  0x23   :  { %2521 = vmatpush3.bf16.msra.mxu0 %v2518_v7  ;;  %309 = vmatprep.mubr.f32.mxu1 %v2724_v3 }
  0x24   :  { %2523 = vmatprep.subr.bf16.mxu0 %v2522_v11 }
  0x25   :  { %2235 = vmatmul.mubr.msk.f32.gmra.mrb[8].mxu0 %vm83_vm3, %v31_v12 }
  0x26   :  { %2243 = vmatmul.mubr.msk.f32.gmra.mrb[8].mxu1 %vm83_vm3, %v31_v12  ;;  %202 = vmatprep.mubr.f32.mxu0 %v2724_v3 }
  0x27   :  { %2525 = vmatpush3.bf16.msra.mxu0 %v2522_v11  ;;  %315 = vmatprep.mubr.f32.mxu1 %v2724_v3 }
  0x28   :  { %2527 = vmatprep.subr.bf16.mxu0 %v2526_v16 }
  0x29   :  { %2236 = vmatmul.mubr.msk.f32.gmra.mrb[10].mxu0 %vm83_vm3, %v32_v13 }
  0x2a   :  { %2244 = vmatmul.mubr.msk.f32.gmra.mrb[10].mxu1 %vm83_vm3, %v32_v13  ;;  %208 = vmatprep.mubr.f32.mxu0 %v2724_v3 }
  0x2b   :  { %321 = vmatprep.mubr.f32.mxu1 %v2724_v3  ;;  %2529 = vmatpush3.bf16.msra.mxu0 %v2526_v16 }
  0x2c   :  { %2531 = vmatprep.subr.bf16.mxu0 %v2530_v20 }
  0x2d   :  { %2237 = vmatmul.mubr.msk.f32.gmra.mrb[12].mxu0 %vm83_vm3, %v33_v17 }
  0x2e   :  { %2245 = vmatmul.mubr.msk.f32.gmra.mrb[12].mxu1 %vm83_vm3, %v33_v17  ;;  %214 = vmatprep.mubr.f32.mxu0 %v2724_v3 }
  0x2f   :  { %327 = vmatprep.mubr.f32.mxu1 %v2724_v3  ;;  %2533 = vmatpush3.bf16.msra.mxu0 %v2530_v20 }
  0x30   :  { %2535 = vmatprep.subr.bf16.mxu0 %v2534_v24 }
  0x31   :  { %2238 = vmatmul.mubr.msk.f32.gmra.mrb[14].mxu0 %vm83_vm3, %v34_v21 }
  0x32   :  { %2246 = vmatmul.mubr.msk.f32.gmra.mrb[14].mxu1 %vm83_vm3, %v34_v21 }
  0x33   :  { %599 = vmatprep.mubr.f32.mxu1 %v2724_v3  ;;  %2537 = vmatpush3.bf16.msra.mxu0 %v2534_v24 }
  0x34   :  { %2560 = vmatprep.subr.msk.bf16.mxu0 %vm2879_vm2, %v2877_v54 }
  0x36   :  { %600 = vmatmul.mubr.f32.vlgmr.msra.gmra.mrb[16].mxu1 %v2724_v3 }
  0x37   :  { %2408 = vmatprep.mubr.msk.f32.mxu1 %vm2727_vm4, %v2724_v3  ;;  %2547 = vmatpush3.bf16.msk.msra.mxu1 %vm2879_vm2, %v3005_v28 }
  0x38   :  { %2550 = vmatprep.subr.msk.bf16.mxu1 %vm2879_vm2, %v2877_v54 }
  0x3a   :  { %2409 = vmatmul.mubr.f32.vlgmr.msra.gmra.mrb[18].mxu1 %v2724_v3 }
  0x3b   :  { %2553 = vmatpush1.bf16.msk.msra.mxu1 %vm2879_vm2, %v2901_v62  ;;  %783 = vmatprep.mubr.f32.mxu1 %v2724_v3 }
  0x3c   :  { %2554 = vmatprep.subr.bf16.mxu1 %v2726_v27 }
  0xe8   :  { %v174_v40 = vpop.f32.mrb[0].mxu0 }
  0xe9   :  { %v175_v41 = vadd.f32 %v174_v40, %v3041_v36  ;;  %v287_v42 = vpop.f32.mrb[0].mxu1  ;;  %v176_v43 = vpop.f32.mrb[1].mxu0 }
  0xea   :  { %v288_v44 = vadd.f32 %v287_v42, %v3043_v37  ;;  %v177_v45 = vadd.f32 %v176_v43, %v3046_v38  ;;  %v289_v46 = vpop.f32.mrb[1].mxu1 }
  0xeb   :  { %v334_v47 = vmax.f32 %v175_v41, 0.0  ;;  %v290_v48 = vadd.f32 %v289_v46, %v3048_v39 }
  0xec   :  { %v336_v49 = vmax.f32 %v288_v44, 0.0  ;;  %v335_v50 = vmax.f32 %v177_v45, 0.0  ;;  %v180_v51 = vpop.f32.mrb[2].mxu0 }
  0xed   :  { %v337_v52 = vmax.f32 %v290_v48, 0.0  ;;  %v181_v53 = vadd.f32 %v180_v51, %v3041_v36  ;;  %v293_v56 = vpop.f32.mrb[2].mxu1  ;;  %v182_v57 = vpop.f32.mrb[3].mxu0 }
  0xee   :  { %v366_v58 = vmax.f32 %v334_v47, %v335_v50  ;;  %v294_v59 = vadd.f32 %v293_v56, %v3043_v37  ;;  %v183_v60 = vadd.f32 %v182_v57, %v3046_v38  ;;  %v295_v61 = vpop.f32.mrb[3].mxu1 }
  0xef   :  { %v374_v63 = vmax.f32 %v336_v49, %v337_v52  ;;  %v338_v0 = vmax.f32 %v181_v53, 0.0  ;;  %v296_v1 = vadd.f32 %v295_v61, %v3048_v39 }
  0xf0   :  { %v340_v2 = vmax.f32 %v294_v59, 0.0  ;;  %v339_v4 = vmax.f32 %v183_v60, 0.0  ;;  %v186_v5 = vpop.f32.mrb[4].mxu0 }
  0xf1   :  { %v341_v6 = vmax.f32 %v296_v1, 0.0  ;;  %v382_v7 = vmax.f32 %v366_v58, %v374_v63  ;;  %v187_v8 = vadd.f32 %v186_v5, %v3041_v36  ;;  %v299_v9 = vpop.f32.mrb[4].mxu1  ;;  %v188_v10 = vpop.f32.mrb[5].mxu0 }
  0xf2   :  { %v367_v11 = vmax.f32 %v338_v0, %v339_v4  ;;  %v300_v12 = vadd.f32 %v299_v9, %v3043_v37  ;;  %v189_v13 = vadd.f32 %v188_v10, %v3046_v38  ;;  %v301_v14 = vpop.f32.mrb[5].mxu1 }
  0xf3   :  { %v375_v15 = vmax.f32 %v340_v2, %v341_v6  ;;  %2392 = vmatprep.mubr.f32.mxu0 %v382_v7  ;;  %v342_v16 = vmax.f32 %v187_v8, 0.0  ;;  %v302_v17 = vadd.f32 %v301_v14, %v3048_v39 }
  0xf4   :  { %v344_v18 = vmax.f32 %v300_v12, 0.0  ;;  %v343_v19 = vmax.f32 %v189_v13, 0.0  ;;  %v192_v20 = vpop.f32.mrb[6].mxu0 }
  0xf5   :  { %v383_v21 = vmax.f32 %v367_v11, %v375_v15  ;;  %v345_v22 = vmax.f32 %v302_v17, 0.0  ;;  %v193_v23 = vadd.f32 %v192_v20, %v3041_v36  ;;  %v305_v24 = vpop.f32.mrb[6].mxu1  ;;  %v194_v25 = vpop.f32.mrb[7].mxu0 }
  0xf6   :  { %v368_v26 = vmax.f32 %v342_v16, %v343_v19  ;;  %v306_v29 = vadd.f32 %v305_v24, %v3043_v37  ;;  %v195_v31 = vadd.f32 %v194_v25, %v3046_v38  ;;  %v307_v33 = vpop.f32.mrb[7].mxu1 }
  0xf7   :  { %2393 = vmatmul.mubr.f32.vlgmr.msra.gmra.mrb[16].mxu0 %v383_v21  ;;  %v376_v35 = vmax.f32 %v344_v18, %v345_v22  ;;  %v346_v40 = vmax.f32 %v193_v23, 0.0  ;;  %v308_v41 = vadd.f32 %v307_v33, %v3048_v39 }
  0xf8   :  { %v348_v42 = vmax.f32 %v306_v29, 0.0  ;;  %v347_v43 = vmax.f32 %v195_v31, 0.0  ;;  %v198_v44 = vpop.f32.mrb[8].mxu0  ;;  %2563 = vmatpush1.bf16.msk.msra.mxu0 %vm2879_vm2, %v2901_v62 }
  0xf9   :  { %v349_v45 = vmax.f32 %v308_v41, 0.0  ;;  %v199_v46 = vadd.f32 %v198_v44, %v3041_v36  ;;  %v311_v47 = vpop.f32.mrb[8].mxu1  ;;  %v200_v48 = vpop.f32.mrb[9].mxu0  ;;  %v384_v49 = vmax.f32 %v368_v26, %v376_v35  ;;  %2570 = vmatprep.subr.msk.bf16.mxu0 %vm2879_vm2, %v2877_v54 }
  0xfa   :  { %v369_v50 = vmax.f32 %v346_v40, %v347_v43  ;;  %v312_v51 = vadd.f32 %v311_v47, %v3043_v37  ;;  %v201_v52 = vadd.f32 %v200_v48, %v3046_v38  ;;  %v313_v53 = vpop.f32.mrb[9].mxu1 }
  0xfb   :  { %v377_v56 = vmax.f32 %v348_v42, %v349_v45  ;;  %v350_v57 = vmax.f32 %v199_v46, 0.0  ;;  %v314_v58 = vadd.f32 %v313_v53, %v3048_v39  ;;  %2395 = vmatprep.mubr.f32.mxu0 %v384_v49 }
  0xfc   :  { %v352_v59 = vmax.f32 %v312_v51, 0.0  ;;  %v351_v60 = vmax.f32 %v201_v52, 0.0  ;;  %v204_v4 = vpop.f32.mrb[10].mxu0 }
  0xfd   :  { %v353_v61 = vmax.f32 %v314_v58, 0.0  ;;  %v385_v63 = vmax.f32 %v369_v50, %v377_v56  ;;  %v317_v5 = vpop.f32.mrb[10].mxu1  ;;  %v205_v6 = vadd.f32 %v204_v4, %v3041_v36  ;;  %v206_v8 = vpop.f32.mrb[11].mxu0 }
  0xfe   :  { %v370_v0 = vmax.f32 %v350_v57, %v351_v60  ;;  %v318_v7 = vadd.f32 %v317_v5, %v3043_v37  ;;  %v319_v9 = vpop.f32.mrb[11].mxu1  ;;  %v207_v10 = vadd.f32 %v206_v8, %v3046_v38 }
  0xff   :  { %v378_v1 = vmax.f32 %v352_v59, %v353_v61  ;;  %2396 = vmatmul.mubr.f32.gmra.mrb[18].mxu0 %v385_v63  ;;  %v320_v11 = vadd.f32 %v319_v9, %v3048_v39  ;;  %v354_v12 = vmax.f32 %v205_v6, 0.0  ;;  %v408_v61 = vsub.s32 1, %v3021_v30 }
 0x100   :  { %v356_v13 = vmax.f32 %v318_v7, 0.0  ;;  %v355_v14 = vmax.f32 %v207_v10, 0.0  ;;  %v210_v17 = vpop.f32.mrb[12].mxu0  ;;  %v696_v7 = vsub.s32 2, %v3021_v30 }
 0x101   :  { %v386_v2 = vmax.f32 %v370_v0, %v378_v1  ;;  %v357_v15 = vmax.f32 %v320_v11, 0.0  ;;  %v323_v16 = vpop.f32.mrb[12].mxu1  ;;  %v211_v22 = vadd.f32 %v210_v17, %v3041_v36  ;;  %v212_v23 = vpop.f32.mrb[13].mxu0  ;;  %v3091_v63 = vrot.slane %v3027_v32, %v408_v61 }
 0x102   :  { %v324_v18 = vadd.f32 %v323_v16, %v3043_v37  ;;  %v325_v19 = vpop.f32.mrb[13].mxu1  ;;  %v371_v20 = vmax.f32 %v354_v12, %v355_v14  ;;  %v213_v26 = vadd.f32 %v212_v23, %v3046_v38  ;;  %v3096_v8 = vrot.slane %v3027_v32, %v696_v7 }
 0x103   :  { %2398 = vmatprep.mubr.f32.mxu0 %v386_v2  ;;  %v379_v21 = vmax.f32 %v356_v13, %v357_v15  ;;  %v326_v24 = vadd.f32 %v325_v19, %v3048_v39  ;;  %v358_v29 = vmax.f32 %v211_v22, 0.0 }
 0x104   :  { %v360_v25 = vmax.f32 %v324_v18, 0.0  ;;  %v359_v40 = vmax.f32 %v213_v26, 0.0  ;;  %v216_v41 = vpop.f32.mrb[14].mxu0 }
 0x105   :  { %v361_v31 = vmax.f32 %v326_v24, 0.0  ;;  %v329_v33 = vpop.f32.mrb[14].mxu1  ;;  %v387_v35 = vmax.f32 %v371_v20, %v379_v21  ;;  %v217_v45 = vadd.f32 %v216_v41, %v3041_v36  ;;  %v218_v46 = vpop.f32.mrb[15].mxu0 }
 0x106   :  { %v330_v42 = vadd.f32 %v329_v33, %v3043_v37  ;;  %v331_v43 = vpop.f32.mrb[15].mxu1  ;;  %v372_v48 = vmax.f32 %v358_v29, %v359_v40  ;;  %v219_v50 = vadd.f32 %v218_v46, %v3046_v38 }
 0x107   :  { %v380_v44 = vmax.f32 %v360_v25, %v361_v31  ;;  %v332_v47 = vadd.f32 %v331_v43, %v3048_v39  ;;  %2399 = vmatmul.mubr.f32.gmra.mrb[20].mxu0 %v387_v35  ;;  %v362_v51 = vmax.f32 %v217_v45, 0.0 }
 0x108   :  { %v364_v49 = vmax.f32 %v330_v42, 0.0  ;;  %v363_v53 = vmax.f32 %v219_v50, 0.0 }
 0x109   :  { %v365_v52 = vmax.f32 %v332_v47, 0.0  ;;  %v388_v56 = vmax.f32 %v372_v48, %v380_v44  ;;  %v601_v37 = vpop.f32.mrb[16].mxu1 }
 0x10a   :  { %v373_v58 = vmax.f32 %v362_v51, %v363_v53  ;;  %v603_v59 = vpop.f32.mrb[17].mxu1 }
 0x10b   :  { %v381_v57 = vmax.f32 %v364_v49, %v365_v52  ;;  %2401 = vmatprep.mubr.f32.mxu0 %v388_v56 }
 0x10d   :  { %v389_v60 = vmax.f32 %v373_v58, %v381_v57  ;;  %v672_v36 = vpop.f32.mrb[18].mxu1 }
 0x10e   :  { %v2410_v39 = vpop.f32.mrb[19].mxu1  ;;  %v698_v9 = vadd.f32 %v3096_v8, %v672_v36 }
 0x10f   :  { %2402 = vmatmul.mubr.f32.gmra.mrb[22].mxu0 %v389_v60 }
 0x110   :  { %963 = vmatprep.mubr.f32.mxu0 %v2724_v3 }
 0x1ca   :  { %v2394_v38 = vpop.f32.mrb[16].mxu0 }
 0x1cb   :  { %v476_v0 = vpop.f32.mrb[17].mxu0  ;;  %v482_v42 = vadd.f32 %v2394_v38, %v3091_v63 }
 0x1cc   :  { %v477_v1 = vadd.f32 %v476_v0, %v3091_v63 }
 0x1ce   :  { %v676_v2 = vadd.f32 %v601_v37, %v477_v1 }
 0x1d0   :  { %v2250_v4 = vmul.f32 -1.442695, %v676_v2 }
 0x1d2   :  { %2634 = vpow2.f32 %v2250_v4  ;;  %v3101_v12 = vpop.f32.mrb[18].mxu0 }
 0x1d3   :  { %v3103_v13 = vpop.f32.mrb[19].mxu0 }
 0x1da   :  { %v3105_v14 = vpop.f32.mrb[20].mxu0 }
 0x1db   :  { %v3107_v15 = vpop.f32.mrb[21].mxu0 }
 0x1dc   :  { %v2635_v5 = vpop.eup %2634 }
 0x1dd   :  { %v680_v6 = vadd.f32 1.0, %v2635_v5 }
 0x1df   :  { %2636 = vrcp.f32 %v680_v6  ;;  %v487_v6 = vadd.f32 %v3103_v13, %v3091_v63 }
 0x1e2   :  { %v3109_v16 = vpop.f32.mrb[22].mxu0 }
 0x1e3   :  { %v3111_v17 = vpop.f32.mrb[23].mxu0 }
 0x1e9   :  { %v2637_v10 = vpop.eup %2636 }
 0x1ea   :  { %v699_v11 = vmul.f32 %v2637_v10, %v698_v9 }
 0x1ec   :  { %701 = vrot.lane.b32.xlu0 %v699_v11, %s2728_s27 }
 0x1f0   :  { %684 = vrot.lane.b32.xlu0 %v603_v59, %s2729_s28 }
 0x25e   :  { %v702_v18 = vpop.permute.xlu0 %701 }
 0x25f   :  { %v704_v19 = vadd.f32 %v702_v18, %v477_v1 }
 0x261   :  { %2638 = vtanh.f32 %v704_v19 }
 0x262   :  { %v685_v21 = vpop.permute.xlu0 %684 }
 0x263   :  { %v687_v22 = vadd.f32 %v685_v21, %v477_v1 }
 0x265   :  { %v2251_v23 = vmul.f32 -1.442695, %v687_v22 }
 0x267   :  { %2640 = vpow2.f32 %v2251_v23 }
 0x26b   :  { %v2639_v20 = vpop.eup %2638 }
 0x26c   :  { %708 = vrot.lane.b32.xlu1 %v2639_v20, %s2730_s29 }
 0x271   :  { %v2641_v24 = vpop.eup %2640 }
 0x272   :  { %v691_v25 = vadd.f32 1.0, %v2641_v24 }
 0x274   :  { %2642 = vrcp.f32 %v691_v25 }
 0x27e   :  { %v2643_v26 = vpop.eup %2642 }
 0x27f   :  { %v706_v29 = vsub.f32 1.0, %v2643_v26  ;;  %v712_v35 = vmul.f32 0.0, %v2643_v26 }
 0x2de   :  { %v709_v31 = vpop.permute.xlu1 %708 }
 0x2df   :  { %v711_v33 = vmul.f32 %v709_v31, %v706_v29 }
 0x2e1   :  { %v713_v40 = vadd.f32 %v712_v35, %v711_v33 }
 0x2e3   :  { %715 = vrot.lane.b32.xlu1 %v713_v40, %s2730_s29 }
 0x355   :  { %v716_v41 = vpop.permute.xlu1 %715 }
 0x356   :  { %2254 = vmatmul.mubr.msk.f32.vlgmr.msra.gmra.mrb[20].mxu1 %vm521_vm5, %v716_v41 }
 0x357   :  { %2557 = vmatpush3.bf16.msk.msra.mxu1 %vm2879_vm2, %v3005_v28  ;;  %2415 = vmatprep.mubr.msk.f32.mxu1 %vm2727_vm4, %v2724_v3 }
 0x358   :  { %2564 = vmatprep.subr.bf16.mxu1 %v2726_v27 }
 0x35a   :  { %2416 = vmatmul.mubr.msk.f32.vlgmr.msra.gmra.mrb[22].mxu1 %vm521_vm5, %v716_v41 }
 0x35b   :  { %2567 = vmatpush3.bf16.msk.msra.mxu1 %vm2879_vm2, %v3005_v28  ;;  %2422 = vmatprep.mubr.msk.f32.mxu1 %vm2727_vm4, %v2724_v3 }
 0x35c   :  { %2574 = vmatprep.subr.bf16.mxu1 %v2726_v27 }
 0x429   :  { %v785_v43 = vpop.f32.mrb[20].mxu1 }
 0x42a   :  { %v860_v44 = vadd.f32 %v785_v43, %v482_v42  ;;  %v787_v45 = vpop.f32.mrb[21].mxu1 }
 0x42b   :  { %868 = vrot.lane.b32.xlu1 %v787_v45, %s2729_s28 }
 0x42c   :  { %v2257_v46 = vmul.f32 -1.442695, %v860_v44 }
 0x42d   :  { %v856_v47 = vpop.f32.mrb[22].mxu1 }
 0x42e   :  { %2644 = vpow2.f32 %v2257_v46  ;;  %v2417_v48 = vpop.f32.mrb[23].mxu1  ;;  %v878_v51 = vadd.f32 %v856_v47, %v3096_v8 }
 0x42f   :  { %v492_v48 = vadd.f32 %v3101_v12, %v3091_v63 }
 0x438   :  { %v2645_v49 = vpop.eup %2644 }
 0x439   :  { %v864_v50 = vadd.f32 1.0, %v2645_v49 }
 0x43b   :  { %2646 = vrcp.f32 %v864_v50 }
 0x445   :  { %v2647_v52 = vpop.eup %2646 }
 0x446   :  { %v879_v53 = vmul.f32 %v2647_v52, %v878_v51 }
 0x448   :  { %881 = vrot.lane.b32.xlu0 %v879_v53, %s2728_s27 }
 0x49d   :  { %v869_v37 = vpop.permute.xlu1 %868 }
 0x49e   :  { %v871_v59 = vadd.f32 %v869_v37, %v482_v42 }
 0x4a0   :  { %v2258_v60 = vmul.f32 -1.442695, %v871_v59 }
 0x4ba   :  { %v882_v56 = vpop.permute.xlu0 %881 }
 0x4bb   :  { %v884_v57 = vadd.f32 %v882_v56, %v482_v42 }
 0x4bd   :  { %2648 = vtanh.f32 %v884_v57 }
 0x4be   :  { %2650 = vpow2.f32 %v2258_v60 }
 0x4c7   :  { %v2649_v58 = vpop.eup %2648 }
 0x4c8   :  { %888 = vrot.lane.b32.xlu0 %v2649_v58, %s2730_s29  ;;  %v2651_v36 = vpop.eup %2650 }
 0x4c9   :  { %v875_v39 = vadd.f32 1.0, %v2651_v36 }
 0x4cb   :  { %2652 = vrcp.f32 %v875_v39 }
 0x4d5   :  { %v2653_v61 = vpop.eup %2652 }
 0x4d6   :  { %v886_v38 = vsub.f32 1.0, %v2653_v61  ;;  %v892_v1 = vmul.f32 %v2653_v61, %v713_v40 }
 0x53a   :  { %v889_v0 = vpop.permute.xlu0 %888 }
 0x53b   :  { %v891_v2 = vmul.f32 %v889_v0, %v886_v38 }
 0x53d   :  { %v893_v4 = vadd.f32 %v892_v1, %v891_v2 }
 0x53f   :  { %895 = vrot.lane.b32.xlu1 %v893_v4, %s2730_s29 }
 0x5b1   :  { %v896_v5 = vpop.permute.xlu1 %895 }
 0x5b2   :  { %2261 = vmatmul.mubr.msk.f32.vlgmr.msra.gmra.mrb[24].mxu0 %vm521_vm5, %v896_v5  ;;  %2423 = vmatmul.mubr.msk.f32.vlgmr.msra.gmra.mrb[24].mxu1 %vm521_vm5, %v896_v5 }
 0x5b3   :  { %2573 = vmatpush1.bf16.msk.msra.mxu0 %vm2879_vm2, %v2901_v62  ;;  %2577 = vmatpush3.bf16.msk.msra.mxu1 %vm2879_vm2, %v3005_v28 }
 0x5b4   :  { %1143 = vmatprep.mubr.f32.mxu0 %v2724_v3  ;;  %2429 = vmatprep.mubr.msk.f32.mxu1 %vm2727_vm4, %v2724_v3 }
 0x5b5   :  { %2580 = vmatprep.subr.msk.bf16.mxu0 %vm2879_vm2, %v2877_v54  ;;  %2584 = vmatprep.subr.bf16.mxu1 %v2726_v27 }
 0x685   :  { %v965_v7 = vpop.f32.mrb[24].mxu0  ;;  %v1036_v9 = vpop.f32.mrb[24].mxu1 }
 0x686   :  { %v1040_v10 = vadd.f32 %v965_v7, %v487_v6  ;;  %v967_v11 = vpop.f32.mrb[25].mxu0  ;;  %v2424_v18 = vpop.f32.mrb[25].mxu1  ;;  %v1058_v22 = vadd.f32 %v1036_v9, %v3096_v8 }
 0x687   :  { %1048 = vrot.lane.b32.xlu1 %v967_v11, %s2729_s28  ;;  %v497_v18 = vadd.f32 %v3107_v15, %v3091_v63 }
 0x688   :  { %v2264_v19 = vmul.f32 -1.442695, %v1040_v10 }
 0x68a   :  { %2654 = vpow2.f32 %v2264_v19 }
 0x694   :  { %v2655_v20 = vpop.eup %2654 }
 0x695   :  { %v1044_v21 = vadd.f32 1.0, %v2655_v20 }
 0x697   :  { %2656 = vrcp.f32 %v1044_v21 }
 0x6a1   :  { %v2657_v23 = vpop.eup %2656 }
 0x6a2   :  { %v1059_v24 = vmul.f32 %v2657_v23, %v1058_v22 }
 0x6a4   :  { %1061 = vrot.lane.b32.xlu0 %v1059_v24, %s2728_s27 }
 0x6f9   :  { %v1049_v29 = vpop.permute.xlu1 %1048 }
 0x6fa   :  { %v1051_v31 = vadd.f32 %v1049_v29, %v487_v6 }
 0x6fc   :  { %v2265_v33 = vmul.f32 -1.442695, %v1051_v31 }
 0x716   :  { %v1062_v25 = vpop.permute.xlu0 %1061 }
 0x717   :  { %v1064_v13 = vadd.f32 %v1062_v25, %v487_v6 }
 0x719   :  { %2658 = vtanh.f32 %v1064_v13 }
 0x71a   :  { %2660 = vpow2.f32 %v2265_v33 }
 0x723   :  { %v2659_v26 = vpop.eup %2658 }
 0x724   :  { %1068 = vrot.lane.b32.xlu0 %v2659_v26, %s2730_s29  ;;  %v2661_v35 = vpop.eup %2660 }
 0x725   :  { %v1055_v40 = vadd.f32 1.0, %v2661_v35 }
 0x727   :  { %2662 = vrcp.f32 %v1055_v40 }
 0x731   :  { %v2663_v41 = vpop.eup %2662 }
 0x732   :  { %v1066_v42 = vsub.f32 1.0, %v2663_v41  ;;  %v1072_v44 = vmul.f32 %v2663_v41, %v893_v4 }
 0x796   :  { %v1069_v43 = vpop.permute.xlu0 %1068 }
 0x797   :  { %v1071_v45 = vmul.f32 %v1069_v43, %v1066_v42 }
 0x799   :  { %v1073_v46 = vadd.f32 %v1072_v44, %v1071_v45 }
 0x79b   :  { %1075 = vrot.lane.b32.xlu1 %v1073_v46, %s2730_s29 }
 0x80d   :  { %v1076_v47 = vpop.permute.xlu1 %1075 }
 0x80e   :  { %2268 = vmatmul.mubr.msk.f32.vlgmr.msra.gmra.mrb[26].mxu0 %vm521_vm5, %v1076_v47  ;;  %2430 = vmatmul.mubr.msk.f32.vlgmr.msra.gmra.mrb[26].mxu1 %vm521_vm5, %v1076_v47 }
 0x80f   :  { %2583 = vmatpush1.bf16.msk.msra.mxu0 %vm2879_vm2, %v2901_v62  ;;  %2587 = vmatpush3.bf16.msk.msra.mxu1 %vm2879_vm2, %v3005_v28 }
 0x810   :  { %1323 = vmatprep.mubr.f32.mxu0 %v2724_v3  ;;  %2436 = vmatprep.mubr.msk.f32.mxu1 %vm2727_vm4, %v2724_v3 }
 0x811   :  { %2590 = vmatprep.subr.msk.bf16.mxu0 %vm2879_vm2, %v2877_v54  ;;  %2594 = vmatprep.subr.bf16.mxu1 %v2726_v27 }
 0x8e1   :  { %v1145_v49 = vpop.f32.mrb[26].mxu0  ;;  %v1216_v50 = vpop.f32.mrb[26].mxu1 }
 0x8e2   :  { %v1220_v51 = vadd.f32 %v1145_v49, %v492_v48  ;;  %v1147_v52 = vpop.f32.mrb[27].mxu0  ;;  %v2431_v53 = vpop.f32.mrb[27].mxu1  ;;  %v1238_v37 = vadd.f32 %v1216_v50, %v3096_v8 }
 0x8e3   :  { %1228 = vrot.lane.b32.xlu1 %v1147_v52, %s2729_s28  ;;  %v502_v52 = vadd.f32 %v3105_v14, %v3091_v63 }
 0x8e4   :  { %v2271_v56 = vmul.f32 -1.442695, %v1220_v51 }
 0x8e6   :  { %2664 = vpow2.f32 %v2271_v56 }
 0x8f0   :  { %v2665_v57 = vpop.eup %2664 }
 0x8f1   :  { %v1224_v58 = vadd.f32 1.0, %v2665_v57 }
 0x8f3   :  { %2666 = vrcp.f32 %v1224_v58 }
 0x8fd   :  { %v2667_v59 = vpop.eup %2666 }
 0x8fe   :  { %v1239_v60 = vmul.f32 %v2667_v59, %v1238_v37 }
 0x900   :  { %1241 = vrot.lane.b32.xlu0 %v1239_v60, %s2728_s27 }
 0x955   :  { %v1229_v61 = vpop.permute.xlu1 %1228 }
 0x956   :  { %v1231_v38 = vadd.f32 %v1229_v61, %v492_v48 }
 0x958   :  { %v2272_v0 = vmul.f32 -1.442695, %v1231_v38 }
 0x972   :  { %v1242_v36 = vpop.permute.xlu0 %1241 }
 0x973   :  { %v1244_v12 = vadd.f32 %v1242_v36, %v492_v48 }
 0x975   :  { %2668 = vtanh.f32 %v1244_v12 }
 0x976   :  { %2670 = vpow2.f32 %v2272_v0 }
 0x97f   :  { %v2669_v39 = vpop.eup %2668 }
 0x980   :  { %1248 = vrot.lane.b32.xlu0 %v2669_v39, %s2730_s29  ;;  %v2671_v1 = vpop.eup %2670 }
 0x981   :  { %v1235_v2 = vadd.f32 1.0, %v2671_v1 }
 0x983   :  { %2672 = vrcp.f32 %v1235_v2 }
 0x98d   :  { %v2673_v4 = vpop.eup %2672 }
 0x98e   :  { %v1246_v5 = vsub.f32 1.0, %v2673_v4  ;;  %v1252_v7 = vmul.f32 %v2673_v4, %v1073_v46 }
 0x9f2   :  { %v1249_v6 = vpop.permute.xlu0 %1248 }
 0x9f3   :  { %v1251_v9 = vmul.f32 %v1249_v6, %v1246_v5 }
 0x9f5   :  { %v1253_v10 = vadd.f32 %v1252_v7, %v1251_v9 }
 0x9f7   :  { %1255 = vrot.lane.b32.xlu1 %v1253_v10, %s2730_s29 }
 0xa69   :  { %v1256_v11 = vpop.permute.xlu1 %1255 }
 0xa6a   :  { %2275 = vmatmul.mubr.msk.f32.vlgmr.msra.gmra.mrb[28].mxu0 %vm521_vm5, %v1256_v11  ;;  %2437 = vmatmul.mubr.msk.f32.vlgmr.msra.gmra.mrb[28].mxu1 %vm521_vm5, %v1256_v11 }
 0xa6b   :  { %2593 = vmatpush1.bf16.msk.msra.mxu0 %vm2879_vm2, %v2901_v62  ;;  %2597 = vmatpush3.bf16.msk.msra.mxu1 %vm2879_vm2, %v3005_v28 }
 0xa6c   :  { %1503 = vmatprep.mubr.f32.mxu0 %v2724_v3  ;;  %2443 = vmatprep.mubr.msk.f32.mxu1 %vm2727_vm4, %v2724_v3 }
 0xa6d   :  { %2600 = vmatprep.subr.msk.bf16.mxu0 %vm2879_vm2, %v2877_v54  ;;  %2604 = vmatprep.subr.bf16.mxu1 %v2726_v27 }
 0xb3d   :  { %v1325_v19 = vpop.f32.mrb[28].mxu0  ;;  %v1396_v20 = vpop.f32.mrb[28].mxu1 }
 0xb3e   :  { %v1400_v21 = vadd.f32 %v1325_v19, %v497_v18  ;;  %v1327_v22 = vpop.f32.mrb[29].mxu0  ;;  %v2438_v23 = vpop.f32.mrb[29].mxu1  ;;  %v1418_v26 = vadd.f32 %v1396_v20, %v3096_v8  ;;  %v507_v20 = vadd.f32 %v3111_v17, %v3091_v63 }
 0xb3f   :  { %1408 = vrot.lane.b32.xlu1 %v1327_v22, %s2729_s28 }
 0xb40   :  { %v2278_v24 = vmul.f32 -1.442695, %v1400_v21 }
 0xb42   :  { %2674 = vpow2.f32 %v2278_v24 }
 0xb4c   :  { %v2675_v25 = vpop.eup %2674 }
 0xb4d   :  { %v1404_v13 = vadd.f32 1.0, %v2675_v25 }
 0xb4f   :  { %2676 = vrcp.f32 %v1404_v13 }
 0xb59   :  { %v2677_v29 = vpop.eup %2676 }
 0xb5a   :  { %v1419_v31 = vmul.f32 %v2677_v29, %v1418_v26 }
 0xb5c   :  { %1421 = vrot.lane.b32.xlu0 %v1419_v31, %s2728_s27 }
 0xbb1   :  { %v1409_v40 = vpop.permute.xlu1 %1408 }
 0xbb2   :  { %v1411_v41 = vadd.f32 %v1409_v40, %v497_v18 }
 0xbb4   :  { %v2279_v42 = vmul.f32 -1.442695, %v1411_v41 }
 0xbce   :  { %v1422_v33 = vpop.permute.xlu0 %1421 }
 0xbcf   :  { %v1424_v15 = vadd.f32 %v1422_v33, %v497_v18 }
 0xbd1   :  { %2678 = vtanh.f32 %v1424_v15 }
 0xbd2   :  { %2680 = vpow2.f32 %v2279_v42 }
 0xbdb   :  { %v2679_v35 = vpop.eup %2678 }
 0xbdc   :  { %1428 = vrot.lane.b32.xlu0 %v2679_v35, %s2730_s29  ;;  %v2681_v43 = vpop.eup %2680 }
 0xbdd   :  { %v1415_v44 = vadd.f32 1.0, %v2681_v43 }
 0xbdf   :  { %2682 = vrcp.f32 %v1415_v44 }
 0xbe9   :  { %v2683_v45 = vpop.eup %2682 }
 0xbea   :  { %v1426_v46 = vsub.f32 1.0, %v2683_v45  ;;  %v1432_v48 = vmul.f32 %v2683_v45, %v1253_v10 }
 0xc4e   :  { %v1429_v47 = vpop.permute.xlu0 %1428 }
 0xc4f   :  { %v1431_v49 = vmul.f32 %v1429_v47, %v1426_v46 }
 0xc51   :  { %v1433_v50 = vadd.f32 %v1432_v48, %v1431_v49 }
 0xc53   :  { %1435 = vrot.lane.b32.xlu1 %v1433_v50, %s2730_s29 }
 0xcc5   :  { %v1436_v51 = vpop.permute.xlu1 %1435 }
 0xcc6   :  { %2282 = vmatmul.mubr.msk.f32.vlgmr.msra.gmra.mrb[30].mxu0 %vm521_vm5, %v1436_v51  ;;  %2444 = vmatmul.mubr.msk.f32.vlgmr.msra.gmra.mrb[30].mxu1 %vm521_vm5, %v1436_v51 }
 0xcc7   :  { %2603 = vmatpush1.bf16.msk.msra.mxu0 %vm2879_vm2, %v2901_v62  ;;  %2607 = vmatpush3.bf16.msk.msra.mxu1 %vm2879_vm2, %v3005_v28 }
 0xcc8   :  { %1683 = vmatprep.mubr.f32.mxu0 %v2724_v3  ;;  %2450 = vmatprep.mubr.msk.f32.mxu1 %vm2727_vm4, %v2724_v3 }
 0xcc9   :  { %2610 = vmatprep.subr.msk.bf16.mxu0 %vm2879_vm2, %v2877_v54  ;;  %2614 = vmatprep.subr.bf16.mxu1 %v2726_v27 }
 0xd99   :  { %v1505_v53 = vpop.f32.mrb[30].mxu0  ;;  %v1576_v56 = vpop.f32.mrb[30].mxu1 }
 0xd9a   :  { %v1580_v57 = vadd.f32 %v1505_v53, %v502_v52  ;;  %v1507_v58 = vpop.f32.mrb[31].mxu0  ;;  %v2445_v37 = vpop.f32.mrb[31].mxu1  ;;  %v1598_v12 = vadd.f32 %v1576_v56, %v3096_v8 }
 0xd9b   :  { %1588 = vrot.lane.b32.xlu1 %v1507_v58, %s2729_s28 }
 0xd9c   :  { %v2285_v59 = vmul.f32 -1.442695, %v1580_v57 }
 0xd9e   :  { %2684 = vpow2.f32 %v2285_v59 }
 0xda8   :  { %v2685_v60 = vpop.eup %2684 }
 0xda9   :  { %v1584_v36 = vadd.f32 1.0, %v2685_v60 }
 0xdab   :  { %2686 = vrcp.f32 %v1584_v36 }
 0xdb5   :  { %v2687_v54 = vpop.eup %2686 }
 0xdb6   :  { %v1599_v39 = vmul.f32 %v2687_v54, %v1598_v12 }
 0xdb8   :  { %1601 = vrot.lane.b32.xlu0 %v1599_v39, %s2728_s27 }
 0xe0d   :  { %v1589_v0 = vpop.permute.xlu1 %1588 }
 0xe0e   :  { %v1591_v1 = vadd.f32 %v1589_v0, %v502_v52 }
 0xe10   :  { %v2286_v2 = vmul.f32 -1.442695, %v1591_v1 }
 0xe2a   :  { %v1602_v61 = vpop.permute.xlu0 %1601 }
 0xe2b   :  { %v1604_v14 = vadd.f32 %v1602_v61, %v502_v52 }
 0xe2d   :  { %2688 = vtanh.f32 %v1604_v14  ;;  %v1984_v14 = vld [vmem:[%s3311_s4] sm:$0xff] }
 0xe2e   :  { %2690 = vpow2.f32 %v2286_v2 }
 0xe37   :  { %v2689_v38 = vpop.eup %2688 }
 0xe38   :  { %1608 = vrot.lane.b32.xlu0 %v2689_v38, %s2730_s29  ;;  %v2691_v4 = vpop.eup %2690 }
 0xe39   :  { %v1595_v5 = vadd.f32 1.0, %v2691_v4 }
 0xe3b   :  { %2692 = vrcp.f32 %v1595_v5 }
 0xe45   :  { %v2693_v6 = vpop.eup %2692 }
 0xe46   :  { %v1606_v7 = vsub.f32 1.0, %v2693_v6  ;;  %v1612_v10 = vmul.f32 %v2693_v6, %v1433_v50  ;;  %v512_v50 = vadd.f32 %v3109_v16, %v3091_v63  ;;  %v3255_v63 = vsub.s32 3, %v3021_v30 }
 0xe48   :  { %v2024_v16 = vrot.slane %v3035_v34, %v3255_v63  ;;  %v1986_v34 = vld [vmem:[%s3311_s4 + $0x10] sm:$0xf] }
 0xe49   :  { %v2619_v38 = vpack.c.bf16 %v1986_v34, %v1984_v14 }
 0xeaa   :  { %v1609_v9 = vpop.permute.xlu0 %1608 }
 0xeab   :  { %v1611_v11 = vmul.f32 %v1609_v9, %v1606_v7 }
 0xead   :  { %v1613_v18 = vadd.f32 %v1612_v10, %v1611_v11 }
 0xeaf   :  { %1615 = vrot.lane.b32.xlu1 %v1613_v18, %s2730_s29 }
 0xf21   :  { %v1616_v19 = vpop.permute.xlu1 %1615 }
 0xf22   :  { %2289 = vmatmul.mubr.msk.f32.vlgmr.msra.gmra.mrb[32].mxu0 %vm521_vm5, %v1616_v19  ;;  %2451 = vmatmul.mubr.msk.f32.vlgmr.msra.gmra.mrb[32].mxu1 %vm521_vm5, %v1616_v19  ;;  %v2301_v19 = vsel %vm1981_vm6, 1.0, %v2724_v3 }
 0xf23   :  { %2613 = vmatpush1.bf16.msk.msra.mxu0 %vm2879_vm2, %v2901_v62  ;;  %2617 = vmatpush3.bf16.msk.msra.mxu1 %vm2879_vm2, %v3005_v28 }
 0xf24   :  { %1863 = vmatprep.mubr.f32.mxu0 %v2724_v3  ;;  %2457 = vmatprep.mubr.msk.f32.mxu1 %vm2727_vm4, %v2724_v3 }
 0xf25   :  { %2618 = vmatprep.subr.bf16.mxu0 %v2726_v27  ;;  %2622 = vmatprep.subr.bf16.mxu1 %v2726_v27 }
 0xff5   :  { %v1685_v21 = vpop.f32.mrb[32].mxu0  ;;  %v1756_v22 = vpop.f32.mrb[32].mxu1 }
 0xff6   :  { %v1760_v23 = vadd.f32 %v1685_v21, %v507_v20  ;;  %v1687_v62 = vpop.f32.mrb[33].mxu0  ;;  %v2452_v24 = vpop.f32.mrb[33].mxu1  ;;  %v1778_v26 = vadd.f32 %v1756_v22, %v3096_v8 }
 0xff7   :  { %1768 = vrot.lane.b32.xlu1 %v1687_v62, %s2729_s28 }
 0xff8   :  { %v2292_v28 = vmul.f32 -1.442695, %v1760_v23 }
 0xffa   :  { %2694 = vpow2.f32 %v2292_v28 }
0x1004   :  { %v2695_v25 = vpop.eup %2694 }
0x1005   :  { %v1764_v13 = vadd.f32 1.0, %v2695_v25 }
0x1007   :  { %2696 = vrcp.f32 %v1764_v13 }
0x1011   :  { %v2697_v29 = vpop.eup %2696 }
0x1012   :  { %v1779_v31 = vmul.f32 %v2697_v29, %v1778_v26 }
0x1014   :  { %1781 = vrot.lane.b32.xlu0 %v1779_v31, %s2728_s27 }
0x1069   :  { %v1769_v15 = vpop.permute.xlu1 %1768 }
0x106a   :  { %v1771_v35 = vadd.f32 %v1769_v15, %v507_v20 }
0x106c   :  { %v2293_v40 = vmul.f32 -1.442695, %v1771_v35 }
0x1086   :  { %v1782_v27 = vpop.permute.xlu0 %1781 }
0x1087   :  { %v1784_v17 = vadd.f32 %v1782_v27, %v507_v20 }
0x1089   :  { %2698 = vtanh.f32 %v1784_v17 }
0x108a   :  { %2700 = vpow2.f32 %v2293_v40 }
0x1093   :  { %v2699_v33 = vpop.eup %2698 }
0x1094   :  { %1788 = vrot.lane.b32.xlu0 %v2699_v33, %s2730_s29  ;;  %v2701_v41 = vpop.eup %2700 }
0x1095   :  { %v1775_v42 = vadd.f32 1.0, %v2701_v41 }
0x1097   :  { %2702 = vrcp.f32 %v1775_v42 }
0x10a1   :  { %v2703_v43 = vpop.eup %2702 }
0x10a2   :  { %v1786_v44 = vsub.f32 1.0, %v2703_v43  ;;  %v1792_v46 = vmul.f32 %v2703_v43, %v1613_v18 }
0x1106   :  { %v1789_v45 = vpop.permute.xlu0 %1788 }
0x1107   :  { %v1791_v47 = vmul.f32 %v1789_v45, %v1786_v44 }
0x1109   :  { %v1793_v48 = vadd.f32 %v1792_v46, %v1791_v47 }
0x110b   :  { %1795 = vrot.lane.b32.xlu1 %v1793_v48, %s2730_s29 }
0x117d   :  { %v1796_v49 = vpop.permute.xlu1 %1795 }
0x117e   :  { %2296 = vmatmul.mubr.msk.f32.vlgmr.msra.gmra.mrb[34].mxu0 %vm521_vm5, %v1796_v49  ;;  %2458 = vmatmul.mubr.msk.f32.vlgmr.msra.gmra.mrb[34].mxu1 %vm521_vm5, %v1796_v49 }
0x117f   :  { %2464 = vmatprep.mubr.msk.f32.mxu0 %vm2727_vm4, %v2724_v3  ;;  %2471 = vmatprep.mubr.msk.f32.mxu1 %vm2727_vm4, %v2724_v3 }
0x1180   :  { %2621 = vmatpush3.bf16.msk.msra.mxu0 %vm2879_vm2, %v2619_v38 }
0x1251   :  { %v1865_v51 = vpop.f32.mrb[34].mxu0  ;;  %v1936_v52 = vpop.f32.mrb[34].mxu1 }
0x1252   :  { %v1940_v53 = vadd.f32 %v1865_v51, %v512_v50  ;;  %v1867_v56 = vpop.f32.mrb[35].mxu0  ;;  %v2459_v57 = vpop.f32.mrb[35].mxu1  ;;  %v1958_v60 = vadd.f32 %v1936_v52, %v3096_v8  ;;  %v2015_v8 = vrot.slane %v3027_v32, %v3255_v63  ;;  %v1985_v51 = vld [vmem:[%s3311_s4 + $0x8] sm:$0xff]  ;;  %v1987_v52 = vld [vmem:[%s3311_s4 + $0x18] sm:$0xf] }
0x1253   :  { %1948 = vrot.lane.b32.xlu1 %v1867_v56, %s2729_s28  ;;  %v2032_v56 = vsub.s32 4, %v3021_v30  ;;  %v2720_v57 = vld [vmem:[%s3310_s5] sm:$0xff] }
0x1254   :  { %v2299_v58 = vmul.f32 -1.442695, %v1940_v53  ;;  %v2623_v53 = vpack.c.bf16 %v1987_v52, %v1985_v51 }
0x1256   :  { %2704 = vpow2.f32 %v2299_v58  ;;  %2625 = vmatpush3.bf16.msk.msra.mxu1 %vm2879_vm2, %v2623_v53  ;;  %v2033_v58 = vrot.slane %v2720_v57, %v2032_v56 }
0x1257   :  { %1975 = vrot.lane.b32.xlu1 %v512_v50, %s2731_s30 }
0x125b   :  { %2026 = vrot.lane.b32.xlu1 %v2024_v16, %s2729_s28 }
0x1260   :  { %v2705_v37 = vpop.eup %2704 }
0x1261   :  { %v1944_v59 = vadd.f32 1.0, %v2705_v37 }
0x1263   :  { %2706 = vrcp.f32 %v1944_v59 }
0x126d   :  { %v2707_v36 = vpop.eup %2706 }
0x126e   :  { %v1959_v12 = vmul.f32 %v2707_v36, %v1958_v60 }
0x1270   :  { %1961 = vrot.lane.b32.xlu0 %v1959_v12, %s2728_s27 }
0x12c5   :  { %v1949_v0 = vpop.permute.xlu1 %1948 }
0x12c6   :  { %v1951_v1 = vadd.f32 %v1949_v0, %v512_v50 }
0x12c8   :  { %v2300_v2 = vmul.f32 -1.442695, %v1951_v1 }
0x12c9   :  { %v1976_v18 = vpop.permute.xlu1 %1975 }
0x12cd   :  { %v2027_v47 = vpop.permute.xlu1 %2026 }
0x12e2   :  { %v1962_v54 = vpop.permute.xlu0 %1961 }
0x12e3   :  { %v1964_v39 = vadd.f32 %v1962_v54, %v512_v50 }
0x12e5   :  { %2708 = vtanh.f32 %v1964_v39 }
0x12e6   :  { %2710 = vpow2.f32 %v2300_v2 }
0x12ef   :  { %v2709_v61 = vpop.eup %2708 }
0x12f0   :  { %1968 = vrot.lane.b32.xlu0 %v2709_v61, %s2730_s29  ;;  %v2711_v4 = vpop.eup %2710 }
0x12f1   :  { %v1955_v32 = vadd.f32 1.0, %v2711_v4 }
0x12f3   :  { %2712 = vrcp.f32 %v1955_v32 }
0x12f4   :  { %2017 = vrot.lane.b32.xlu0 %v2015_v8, %s2729_s28 }
0x12fd   :  { %v2713_v5 = vpop.eup %2712 }
0x12fe   :  { %v1966_v6 = vsub.f32 1.0, %v2713_v5  ;;  %v1972_v9 = vmul.f32 %v2713_v5, %v1793_v48 }
0x1362   :  { %v1969_v7 = vpop.permute.xlu0 %1968 }
0x1363   :  { %v1971_v10 = vmul.f32 %v1969_v7, %v1966_v6 }
0x1365   :  { %v1973_v11 = vadd.f32 %v1972_v9, %v1971_v10 }
0x1366   :  { %v2018_v45 = vpop.permute.xlu0 %2017 }
0x1367   :  { %v1978_v20 = vadd.f32 %v1976_v18, %v1973_v11  ;;  %v2721_v11 = vld [vmem:[%s3310_s5 + $0x10] sm:$0xff] }
0x1368   :  { %v2139_v18 = vrot.slane %v2721_v11, %v3255_v63 }
0x1369   :  { %v1988_v21 = vmul.f32 %v2301_v19, %v1978_v20 }
0x136b   :  { %v1990_v22 = vsel %vm1989_vm7, %v1988_v21, 0.0  ;;  %v2722_v21 = vld [vmem:[%s3310_s5 + $0x18] sm:$0xff] }
0x136c   :  { %v1991_v23 = vrot.slane %v1990_v22, 4 }
0x136e   :  { %v1992_v62 = vadd.f32 %v1991_v23, %v1990_v22  ;;  %v2144_v22 = vrot.slane %v2722_v21, %v3255_v63 }
0x1370   :  { %v1993_v24 = vrot.slane %v1992_v62, 2 }
0x1372   :  { %v1994_v28 = vadd.f32 %v1993_v24, %v1992_v62  ;;  %v2723_v24 = vld [vmem:[%s3310_s5 + $0x8] sm:$0xff] }
0x1374   :  { %v1995_v25 = vrot.slane %v1994_v28, 1 }
0x1376   :  { %v1996_v13 = vadd.f32 %v1995_v25, %v1994_v28  ;;  %v2149_v28 = vrot.slane %v2723_v24, %v2032_v56 }
0x1378   :  { %v1997_v26 = vmul.f32 0.5, %v1996_v13 }
0x137a   :  { %v1998_v29 = vsub.f32 %v1978_v20, %v1997_v26 }
0x137c   :  { %v1999_v31 = vmul.f32 %v2301_v19, %v1998_v29 }
0x137e   :  { %v2000_v27 = vmul.f32 %v1999_v31, %v1999_v31 }
0x1380   :  { %v2001_v17 = vsel %vm1989_vm7, %v2000_v27, 0.0 }
0x1381   :  { %v2002_v33 = vrot.slane %v2001_v17, 4 }
0x1383   :  { %v2003_v15 = vadd.f32 %v2002_v33, %v2001_v17 }
0x1385   :  { %v2004_v35 = vrot.slane %v2003_v15, 2 }
0x1387   :  { %v2005_v40 = vadd.f32 %v2004_v35, %v2003_v15 }
0x1389   :  { %v2006_v3 = vrot.slane %v2005_v40, 1 }
0x138b   :  { %v2007_v41 = vadd.f32 %v2006_v3, %v2005_v40 }
0x138d   :  { %v2008_v42 = vmul.f32 0.5, %v2007_v41 }
0x138f   :  { %v2009_v43 = vadd.f32 1e-05, %v2008_v42 }
0x1391   :  { %2714 = vrsqrt.f32 %v2009_v43 }
0x139b   :  { %v2715_v44 = vpop.eup %2714 }
0x139c   :  { %v2011_v46 = vmul.f32 %v2715_v44, %v1998_v29 }
0x139e   :  { %v2020_v48 = vmul.f32 %v2018_v45, %v2011_v46 }
0x13a0   :  { %v2029_v49 = vadd.f32 %v2027_v47, %v2020_v48 }
0x13a2   :  { %2035 = vrot.lane.b32.xlu0 %v2029_v49, %s2730_s29 }
0x1414   :  { %v2036_v50 = vpop.permute.xlu0 %2035 }
0x1415   :  { %2465 = vmatmul.mubr.msk.f32.vlgmr.msra.gmra.mrb[36].mxu0 %vm521_vm5, %v2036_v50 }
0x14e8   :  { %v2108_v37 = vpop.f32.mrb[36].mxu0 }
0x14e9   :  { %v2109_v59 = vadd.f32 %v2108_v37, %v2033_v58  ;;  %v2466_v60 = vpop.f32.mrb[37].mxu0 }
0x14eb   :  { %2716 = vtanh.f32 %v2109_v59 }
0x14f5   :  { %v2717_v36 = vpop.eup %2716 }
0x14f6   :  { %v2113_v12 = vmul.f32 %v2717_v36, %v2301_v19 }
0x14f8   :  { %v2114_v16 = vsel %vm521_vm5, %v2113_v12, 0.0 }
0x14f9   :  { %v2115_v54 = vrot.slane %v2114_v16, 4 }
0x14fb   :  { %v2116_v39 = vadd.f32 %v2115_v54, %v2114_v16 }
0x14fd   :  { %v2117_v61 = vrot.slane %v2116_v39, 2 }
0x14ff   :  { %v2118_v55 = vadd.f32 %v2117_v61, %v2116_v39 }
0x1501   :  { %v2119_v8 = vrot.slane %v2118_v55, 1 }
0x1503   :  { %v2120_v14 = vadd.f32 %v2119_v8, %v2118_v55 }
0x1505   :  { %v2121_v30 = vmul.f32 0.5, %v2120_v14 }
0x1507   :  { %v2122_v34 = vsub.f32 %v2717_v36, %v2121_v30 }
0x1509   :  { %v2123_v38 = vmul.f32 %v2301_v19, %v2122_v34 }
0x150b   :  { %v2124_v0 = vmul.f32 %v2123_v38, %v2123_v38 }
0x150d   :  { %v2125_v1 = vsel %vm521_vm5, %v2124_v0, 0.0 }
0x150e   :  { %v2126_v2 = vrot.slane %v2125_v1, 4 }
0x1510   :  { %v2127_v4 = vadd.f32 %v2126_v2, %v2125_v1 }
0x1512   :  { %v2128_v32 = vrot.slane %v2127_v4, 2 }
0x1514   :  { %v2129_v5 = vadd.f32 %v2128_v32, %v2127_v4 }
0x1516   :  { %v2130_v6 = vrot.slane %v2129_v5, 1 }
0x1518   :  { %v2131_v7 = vadd.f32 %v2130_v6, %v2129_v5 }
0x151a   :  { %v2132_v9 = vmul.f32 0.5, %v2131_v7 }
0x151c   :  { %v2133_v10 = vadd.f32 1e-05, %v2132_v9 }
0x151e   :  { %2718 = vrsqrt.f32 %v2133_v10 }
0x1528   :  { %v2719_v20 = vpop.eup %2718 }
0x1529   :  { %v2135_v19 = vmul.f32 %v2719_v20, %v2122_v34 }
0x152b   :  { %v2140_v23 = vmul.f32 %v2139_v18, %v2135_v19 }
0x152d   :  { %v2145_v62 = vadd.f32 %v2144_v22, %v2140_v23 }
0x152f   :  { %2472 = vmatmul.mubr.msk.f32.vlgmr.msra.gmra.mrb[36].mxu1 %vm521_vm5, %v2145_v62 }
0x1602   :  { %v2222_v25 = vpop.f32.mrb[36].mxu1 }
0x1603   :  { %v2223_v13 = vadd.f32 %v2222_v25, %v2149_v28  ;;  %v2473_v26 = vpop.f32.mrb[37].mxu1 }
0x1605   :  { %2226 = vst.msk [vmem:[%s3312_s6] sm:$0xff] %vm83_vm3, %v2223_v13 }

</bundles_post_ra>
